<compile_context>
chip_gen: v7x
topology: tpu7x:2x2x1
jax: 0.10.0
libtpu: 0.0.40
codegen_flags: <defaults>
</compile_context>

<pallas_src>
import jax
import jax.numpy as jnp
from jax.experimental import pallas as pl
from jax.experimental.pallas import tpu as pltpu


def _leaky_relu(v, slope=0.2):
    return jnp.where(v > 0, v, slope * v)


def _disc_kernel(ximg_ref, xemb_ref,
                 w1i_ref, w1e_ref, b1_ref,
                 w2_ref, b2_ref,
                 w3_ref, b3_ref,
                 w4_ref, b4_ref,
                 o_ref):
    # Layer 1: split contraction (image pixels + label embedding). bf16 MXU, f32 acc.
    h = (jnp.dot(ximg_ref[...], w1i_ref[...], preferred_element_type=jnp.float32)
         + jnp.dot(xemb_ref[...], w1e_ref[...], preferred_element_type=jnp.float32)
         + b1_ref[...])
    h = _leaky_relu(h)

    # Dropout(0.4) -> identity (eval mode)
    h = jnp.dot(h.astype(jnp.bfloat16), w2_ref[...],
                preferred_element_type=jnp.float32) + b2_ref[...]
    h = _leaky_relu(h)

    # Dropout(0.4) -> identity (eval mode)
    h = jnp.dot(h.astype(jnp.bfloat16), w3_ref[...],
                preferred_element_type=jnp.float32) + b3_ref[...]
    h = _leaky_relu(h)

    # Final 512 -> 1: an N=1 matmul wastes the whole MXU tile; do a VPU/XLU
    # row reduction against the (1, 512) weight row instead.
    logits = jnp.sum(h * w4_ref[...], axis=-1, keepdims=True) + b4_ref[...]
    o_ref[...] = jax.nn.sigmoid(logits)


def init_discriminator_params(key, n_classes, channels, img_size):
    """Deterministic synthetic parameters with the same shapes as the PyTorch module."""
    d_in = n_classes + channels * img_size * img_size
    keys = jax.random.split(key, 9)
    s = 0.02
    params = {
        "emb": jax.random.normal(keys[0], (n_classes, n_classes), jnp.float32),
        "w1": jax.random.normal(keys[1], (d_in, 512), jnp.float32) * s,
        "b1": jax.random.normal(keys[2], (512,), jnp.float32) * s,
        "w2": jax.random.normal(keys[3], (512, 512), jnp.float32) * s,
        "b2": jax.random.normal(keys[4], (512,), jnp.float32) * s,
        "w3": jax.random.normal(keys[5], (512, 512), jnp.float32) * s,
        "b3": jax.random.normal(keys[6], (512,), jnp.float32) * s,
        "w4": jax.random.normal(keys[7], (512, 1), jnp.float32) * s,
        "b4": jax.random.normal(keys[8], (1,), jnp.float32) * s,
    }
    return params


@jax.jit
def discriminator_forward(img, labels, params):
    B = img.shape[0]
    CHW = img.shape[1] * img.shape[2] * img.shape[3]
    n_classes = params["emb"].shape[0]

    # Glue: flatten + embedding lookup only. No concat / pad materialization in
    # HBM; the first-layer contraction is split inside the kernel instead.
    img_flat = img.reshape(B, CHW).astype(jnp.bfloat16)
    emb = jnp.take(params["emb"], labels, axis=0).astype(jnp.bfloat16)

    # bf16 matmul operands (halves weight DMA bytes), f32 biases.
    w1i = params["w1"][:CHW].astype(jnp.bfloat16)         # (CHW, 512)
    w1e = params["w1"][CHW:].astype(jnp.bfloat16)         # (n_classes, 512)
    w2 = params["w2"].astype(jnp.bfloat16)
    w3 = params["w3"].astype(jnp.bfloat16)
    b1 = params["b1"].reshape(1, 512)
    b2 = params["b2"].reshape(1, 512)
    b3 = params["b3"].reshape(1, 512)
    w4 = params["w4"].reshape(1, 512)                     # final layer as VPU reduction row
    b4 = params["b4"].reshape(1, 1)

    # Batch tile: big enough to keep the MXU busy; small enough that resident
    # weights (~2-4 MiB bf16 double-buffered) + 2x (TILE_B, CHW) bf16 activation
    # buffers fit the default scoped VMEM on v5e (16 MiB) and v7x (32 MiB).
    TILE_B = B if B <= 512 else 512
    grid = (pl.cdiv(B, TILE_B),)

    batch_map = lambda i: (i, 0)
    const_map = lambda i: (0, 0)

    out = pl.pallas_call(
        _disc_kernel,
        out_shape=jax.ShapeDtypeStruct((B, 1), jnp.float32),
        grid=grid,
        in_specs=[
            pl.BlockSpec((TILE_B, CHW), batch_map),        # img_flat  (tiled over batch)
            pl.BlockSpec((TILE_B, n_classes), batch_map),  # label embedding
            pl.BlockSpec((CHW, 512), const_map),           # w1 (image rows)   VMEM-resident
            pl.BlockSpec((n_classes, 512), const_map),     # w1 (embed rows)   VMEM-resident
            pl.BlockSpec((1, 512), const_map),             # b1
            pl.BlockSpec((512, 512), const_map),           # w2
            pl.BlockSpec((1, 512), const_map),             # b2
            pl.BlockSpec((512, 512), const_map),           # w3
            pl.BlockSpec((1, 512), const_map),             # b3
            pl.BlockSpec((1, 512), const_map),             # w4 (reduction row)
            pl.BlockSpec((1, 1), const_map),               # b4
        ],
        out_specs=pl.BlockSpec((TILE_B, 1), batch_map),
        compiler_params=pltpu.CompilerParams(
            # Batch axis is embarrassingly parallel -> megacore sharding on v7x.
            dimension_semantics=("parallel",),
        ),
    )(img_flat, emb, w1i, w1e, b1, w2, b2, w3, b3, w4, b4)
    return out


def _reference_forward(img, labels, params):
    """Pure-JAX f32 reference (matches the PyTorch module in eval mode)."""
    B = img.shape[0]
    emb = jnp.take(params["emb"], labels, axis=0)
    h = jnp.concatenate([img.reshape(B, -1), emb], axis=-1)
    h = _leaky_relu(h @ params["w1"] + params["b1"])
    h = _leaky_relu(h @ params["w2"] + params["b2"])
    h = _leaky_relu(h @ params["w3"] + params["b3"])
    return jax.nn.sigmoid(h @ params["w4"] + params["b4"])


if __name__ == "__main__":
    n_classes, channels, img_size, batch = 8, 4, 16, 2

    key = jax.random.PRNGKey(0)
    k_img, k_lab, k_par = jax.random.split(key, 3)

    img = jax.random.normal(k_img, (batch, channels, img_size, img_size), jnp.float32)
    labels = jax.random.randint(k_lab, (batch,), 0, n_classes, jnp.int32)
    params = init_discriminator_params(k_par, n_classes, channels, img_size)

    validity = discriminator_forward(img, labels, params)
    validity = jax.block_until_ready(validity)

    ref = _reference_forward(img, labels, params)
    assert validity.shape == (batch, 1)
    # bf16 MXU matmuls (f32 accumulation) vs f32 reference -> loosened tolerance.
    assert jnp.allclose(validity, ref, atol=2e-2, rtol=2e-2), (
        f"max abs diff {jnp.max(jnp.abs(validity - ref))}")

    print("KERNEL_OK")
</pallas_src>

<mosaic_0001>
module attributes {stable_mosaic.version = 11 : i64} {
  func.func @_disc_kernel(%arg0: i32, %arg1: memref<2x1024xbf16, #tpu.memory_space<vmem>>, %arg2: memref<2x8xbf16, #tpu.memory_space<vmem>>, %arg3: memref<1024x512xbf16, #tpu.memory_space<vmem>>, %arg4: memref<8x512xbf16, #tpu.memory_space<vmem>>, %arg5: memref<1x512xf32, #tpu.memory_space<vmem>>, %arg6: memref<512x512xbf16, #tpu.memory_space<vmem>>, %arg7: memref<1x512xf32, #tpu.memory_space<vmem>>, %arg8: memref<512x512xbf16, #tpu.memory_space<vmem>>, %arg9: memref<1x512xf32, #tpu.memory_space<vmem>>, %arg10: memref<1x512xf32, #tpu.memory_space<vmem>>, %arg11: memref<1x1xf32, #tpu.memory_space<vmem>>, %arg12: memref<2x1xf32, #tpu.memory_space<vmem>>) attributes {dimension_semantics = [#tpu.dimension_semantics<parallel>], iteration_bounds = array<i64: 1>, scalar_prefetch = 0 : i64, scratch_operands = 0 : i64, tpu.core_type = #tpu.core_type<tc>, window_params = [{transform_indices = @transform_0, window_bounds = array<i64: 2, 1024>}, {transform_indices = @transform_1, window_bounds = array<i64: 2, 8>}, {pipeline_mode = #tpu.pipeline_mode<synchronous>, transform_indices = @transform_2, window_bounds = array<i64: 1024, 512>}, {pipeline_mode = #tpu.pipeline_mode<synchronous>, transform_indices = @transform_3, window_bounds = array<i64: 8, 512>}, {pipeline_mode = #tpu.pipeline_mode<synchronous>, transform_indices = @transform_4, window_bounds = array<i64: 1, 512>}, {pipeline_mode = #tpu.pipeline_mode<synchronous>, transform_indices = @transform_5, window_bounds = array<i64: 512, 512>}, {pipeline_mode = #tpu.pipeline_mode<synchronous>, transform_indices = @transform_6, window_bounds = array<i64: 1, 512>}, {pipeline_mode = #tpu.pipeline_mode<synchronous>, transform_indices = @transform_7, window_bounds = array<i64: 512, 512>}, {pipeline_mode = #tpu.pipeline_mode<synchronous>, transform_indices = @transform_8, window_bounds = array<i64: 1, 512>}, {pipeline_mode = #tpu.pipeline_mode<synchronous>, transform_indices = @transform_9, window_bounds = array<i64: 1, 512>}, {pipeline_mode = #tpu.pipeline_mode<synchronous>, transform_indices = @transform_10, window_bounds = array<i64: 1, 1>}, {transform_indices = @transform_11, window_bounds = array<i64: 2, 1>}]} {
    %c0 = arith.constant 0 : index
    %c0_0 = arith.constant 0 : index
    %0 = vector.load %arg1[%c0, %c0_0] : memref<2x1024xbf16, #tpu.memory_space<vmem>>, vector<2x1024xbf16>
    %c0_1 = arith.constant 0 : index
    %c0_2 = arith.constant 0 : index
    %1 = vector.load %arg3[%c0_1, %c0_2] : memref<1024x512xbf16, #tpu.memory_space<vmem>>, vector<1024x512xbf16>
    %cst = arith.constant dense<0.000000e+00> : vector<2x512xf32>
    %2 = tpu.matmul %0, %1, %cst {dimension_numbers = #tpu.dot_dimension_numbers<[1], [0], [0], [1], [0, 0, 1, 1], [], []>} : vector<2x1024xbf16>, vector<1024x512xbf16>, vector<2x512xf32> -> vector<2x512xf32>
    %c0_3 = arith.constant 0 : index
    %c0_4 = arith.constant 0 : index
    %3 = vector.load %arg2[%c0_3, %c0_4] : memref<2x8xbf16, #tpu.memory_space<vmem>>, vector<2x8xbf16>
    %c0_5 = arith.constant 0 : index
    %c0_6 = arith.constant 0 : index
    %4 = vector.load %arg4[%c0_5, %c0_6] : memref<8x512xbf16, #tpu.memory_space<vmem>>, vector<8x512xbf16>
    %cst_7 = arith.constant dense<0.000000e+00> : vector<2x512xf32>
    %5 = tpu.matmul %3, %4, %cst_7 {dimension_numbers = #tpu.dot_dimension_numbers<[1], [0], [0], [1], [0, 0, 1, 1], [], []>} : vector<2x8xbf16>, vector<8x512xbf16>, vector<2x512xf32> -> vector<2x512xf32>
    %6 = arith.addf %2, %5 : vector<2x512xf32>
    %c0_8 = arith.constant 0 : index
    %c0_9 = arith.constant 0 : index
    %7 = vector.load %arg5[%c0_8, %c0_9] : memref<1x512xf32, #tpu.memory_space<vmem>>, vector<1x512xf32>
    %8 = vector.broadcast %7 : vector<1x512xf32> to vector<2x512xf32>
    %9 = arith.addf %6, %8 : vector<2x512xf32>
    %cst_10 = arith.constant 0.000000e+00 : f32
    %10 = vector.broadcast %cst_10 : f32 to vector<2x512xf32>
    %11 = arith.cmpf ogt, %9, %10 : vector<2x512xf32>
    %cst_11 = arith.constant 2.000000e-01 : f32
    %12 = vector.broadcast %cst_11 : f32 to vector<2x512xf32>
    %13 = arith.mulf %12, %9 : vector<2x512xf32>
    %14 = arith.select %11, %9, %13 : vector<2x512xi1>, vector<2x512xf32>
    %15 = arith.truncf %14 : vector<2x512xf32> to vector<2x512xbf16>
    %c0_12 = arith.constant 0 : index
    %c0_13 = arith.constant 0 : index
    %16 = vector.load %arg6[%c0_12, %c0_13] : memref<512x512xbf16, #tpu.memory_space<vmem>>, vector<512x512xbf16>
    %cst_14 = arith.constant dense<0.000000e+00> : vector<2x512xf32>
    %17 = tpu.matmul %15, %16, %cst_14 {dimension_numbers = #tpu.dot_dimension_numbers<[1], [0], [0], [1], [0, 0, 1, 1], [], []>} : vector<2x512xbf16>, vector<512x512xbf16>, vector<2x512xf32> -> vector<2x512xf32>
    %c0_15 = arith.constant 0 : index
    %c0_16 = arith.constant 0 : index
    %18 = vector.load %arg7[%c0_15, %c0_16] : memref<1x512xf32, #tpu.memory_space<vmem>>, vector<1x512xf32>
    %19 = vector.broadcast %18 : vector<1x512xf32> to vector<2x512xf32>
    %20 = arith.addf %17, %19 : vector<2x512xf32>
    %cst_17 = arith.constant 0.000000e+00 : f32
    %21 = vector.broadcast %cst_17 : f32 to vector<2x512xf32>
    %22 = arith.cmpf ogt, %20, %21 : vector<2x512xf32>
    %cst_18 = arith.constant 2.000000e-01 : f32
    %23 = vector.broadcast %cst_18 : f32 to vector<2x512xf32>
    %24 = arith.mulf %23, %20 : vector<2x512xf32>
    %25 = arith.select %22, %20, %24 : vector<2x512xi1>, vector<2x512xf32>
    %26 = arith.truncf %25 : vector<2x512xf32> to vector<2x512xbf16>
    %c0_19 = arith.constant 0 : index
    %c0_20 = arith.constant 0 : index
    %27 = vector.load %arg8[%c0_19, %c0_20] : memref<512x512xbf16, #tpu.memory_space<vmem>>, vector<512x512xbf16>
    %cst_21 = arith.constant dense<0.000000e+00> : vector<2x512xf32>
    %28 = tpu.matmul %26, %27, %cst_21 {dimension_numbers = #tpu.dot_dimension_numbers<[1], [0], [0], [1], [0, 0, 1, 1], [], []>} : vector<2x512xbf16>, vector<512x512xbf16>, vector<2x512xf32> -> vector<2x512xf32>
    %c0_22 = arith.constant 0 : index
    %c0_23 = arith.constant 0 : index
    %29 = vector.load %arg9[%c0_22, %c0_23] : memref<1x512xf32, #tpu.memory_space<vmem>>, vector<1x512xf32>
    %30 = vector.broadcast %29 : vector<1x512xf32> to vector<2x512xf32>
    %31 = arith.addf %28, %30 : vector<2x512xf32>
    %cst_24 = arith.constant 0.000000e+00 : f32
    %32 = vector.broadcast %cst_24 : f32 to vector<2x512xf32>
    %33 = arith.cmpf ogt, %31, %32 : vector<2x512xf32>
    %cst_25 = arith.constant 2.000000e-01 : f32
    %34 = vector.broadcast %cst_25 : f32 to vector<2x512xf32>
    %35 = arith.mulf %34, %31 : vector<2x512xf32>
    %36 = arith.select %33, %31, %35 : vector<2x512xi1>, vector<2x512xf32>
    %c0_26 = arith.constant 0 : index
    %c0_27 = arith.constant 0 : index
    %37 = vector.load %arg10[%c0_26, %c0_27] : memref<1x512xf32, #tpu.memory_space<vmem>>, vector<1x512xf32>
    %38 = vector.broadcast %37 : vector<1x512xf32> to vector<2x512xf32>
    %39 = arith.mulf %36, %38 : vector<2x512xf32>
    %cst_28 = arith.constant dense<0.000000e+00> : vector<2xf32>
    %40 = vector.multi_reduction <add>, %39, %cst_28 [1] : vector<2x512xf32> to vector<2xf32>
    %41 = vector.shape_cast %40 : vector<2xf32> to vector<2x1xf32>
    %c0_29 = arith.constant 0 : index
    %c0_30 = arith.constant 0 : index
    %42 = vector.load %arg11[%c0_29, %c0_30] : memref<1x1xf32, #tpu.memory_space<vmem>>, vector<1x1xf32>
    %43 = vector.broadcast %42 : vector<1x1xf32> to vector<2x1xf32>
    %44 = arith.addf %41, %43 : vector<2x1xf32>
    %45 = arith.negf %44 : vector<2x1xf32>
    %46 = math.exp %45 : vector<2x1xf32>
    %cst_31 = arith.constant 1.000000e+00 : f32
    %47 = vector.broadcast %cst_31 : f32 to vector<2x1xf32>
    %48 = arith.addf %47, %46 : vector<2x1xf32>
    %49 = arith.divf %47, %48 : vector<2x1xf32>
    %c0_32 = arith.constant 0 : index
    %c0_33 = arith.constant 0 : index
    %50 = vector.load %arg12[%c0_32, %c0_33] : memref<2x1xf32, #tpu.memory_space<vmem>>, vector<2x1xf32>
    tpu.vector_store %arg12[%c0_32, %c0_33], %49 {strides = array<i32>} : memref<2x1xf32, #tpu.memory_space<vmem>>, vector<2x1xf32>,
    return
  }
  func.func @transform_0(%arg0: i32) -> (i32, i32) {
    %c0_i32 = arith.constant 0 : i32
    %c0_i32_0 = arith.constant 0 : i32
    return %arg0, %c0_i32 : i32, i32
  }
  func.func @transform_1(%arg0: i32) -> (i32, i32) {
    %c0_i32 = arith.constant 0 : i32
    %c0_i32_0 = arith.constant 0 : i32
    return %arg0, %c0_i32 : i32, i32
  }
  func.func @transform_2(%arg0: i32) -> (i32, i32) {
    %c0_i32 = arith.constant 0 : i32
    %c0_i32_0 = arith.constant 0 : i32
    %c0_i32_1 = arith.constant 0 : i32
    return %c0_i32, %c0_i32_0 : i32, i32
  }
  func.func @transform_3(%arg0: i32) -> (i32, i32) {
    %c0_i32 = arith.constant 0 : i32
    %c0_i32_0 = arith.constant 0 : i32
    %c0_i32_1 = arith.constant 0 : i32
    return %c0_i32, %c0_i32_0 : i32, i32
  }
  func.func @transform_4(%arg0: i32) -> (i32, i32) {
    %c0_i32 = arith.constant 0 : i32
    %c0_i32_0 = arith.constant 0 : i32
    %c0_i32_1 = arith.constant 0 : i32
    return %c0_i32, %c0_i32_0 : i32, i32
  }
  func.func @transform_5(%arg0: i32) -> (i32, i32) {
    %c0_i32 = arith.constant 0 : i32
    %c0_i32_0 = arith.constant 0 : i32
    %c0_i32_1 = arith.constant 0 : i32
    return %c0_i32, %c0_i32_0 : i32, i32
  }
  func.func @transform_6(%arg0: i32) -> (i32, i32) {
    %c0_i32 = arith.constant 0 : i32
    %c0_i32_0 = arith.constant 0 : i32
    %c0_i32_1 = arith.constant 0 : i32
    return %c0_i32, %c0_i32_0 : i32, i32
  }
  func.func @transform_7(%arg0: i32) -> (i32, i32) {
    %c0_i32 = arith.constant 0 : i32
    %c0_i32_0 = arith.constant 0 : i32
    %c0_i32_1 = arith.constant 0 : i32
    return %c0_i32, %c0_i32_0 : i32, i32
  }
  func.func @transform_8(%arg0: i32) -> (i32, i32) {
    %c0_i32 = arith.constant 0 : i32
    %c0_i32_0 = arith.constant 0 : i32
    %c0_i32_1 = arith.constant 0 : i32
    return %c0_i32, %c0_i32_0 : i32, i32
  }
  func.func @transform_9(%arg0: i32) -> (i32, i32) {
    %c0_i32 = arith.constant 0 : i32
    %c0_i32_0 = arith.constant 0 : i32
    %c0_i32_1 = arith.constant 0 : i32
    return %c0_i32, %c0_i32_0 : i32, i32
  }
  func.func @transform_10(%arg0: i32) -> (i32, i32) {
    %c0_i32 = arith.constant 0 : i32
    %c0_i32_0 = arith.constant 0 : i32
    %c0_i32_1 = arith.constant 0 : i32
    return %c0_i32, %c0_i32_0 : i32, i32
  }
  func.func @transform_11(%arg0: i32) -> (i32, i32) {
    %c0_i32 = arith.constant 0 : i32
    %c0_i32_0 = arith.constant 0 : i32
    return %arg0, %c0_i32 : i32, i32
  }
}

</mosaic_0001>

<bundles_post_ra>
// kernel: discriminator_forward.1
= control target key start
LH: loop header
LB: loop body
LE: loop exit
PB: predicated region body
PF: predicated region fallthrough
CT: control target
= control target key end

     0   :  { %vm315_vm0 = vcmask 1043456   ;;  %v5435_v2 = vmov 0   ;;  %vm311_vm1 = vcmask 64512   ;;  %v5436_v44 = vmov 1966171168   ;;  %s7167_s3 = inlined_call_operand.vmem [shape: bf16[8,512], index: 3, kind: input, shape index: {}]   ;;  %s7168_s1 = inlined_call_operand.vmem [shape: bf16[2,8], index: 1, kind: input, shape index: {}]   ;;  %s7169_s2 = inlined_call_operand.vmem [shape: bf16[1024,512], index: 2, kind: input, shape index: {}]   ;;  %s7170_s0 = inlined_call_operand.vmem [shape: bf16[2,1024], index: 0, kind: input, shape index: {}]   ;;  %s7171_s5 = inlined_call_operand.vmem [shape: bf16[512,512], index: 5, kind: input, shape index: {}]   ;;  %s7172_s4 = inlined_call_operand.vmem [shape: f32[1,512], index: 4, kind: input, shape index: {}]   ;;  %s7173_s7 = inlined_call_operand.vmem [shape: bf16[512,512], index: 7, kind: input, shape index: {}]   ;;  %s7174_s6 = inlined_call_operand.vmem [shape: f32[1,512], index: 6, kind: input, shape index: {}]   ;;  %s7175_s10 = inlined_call_operand.<no memory space> [shape: f32[1,1], index: 10, kind: input, shape index: {}]   ;;  %s7176_s8 = inlined_call_operand.vmem [shape: f32[1,512], index: 8, kind: input, shape index: {}]   ;;  %s7177_s9 = inlined_call_operand.vmem [shape: f32[1,512], index: 9, kind: input, shape index: {}]   ;;  %s7178_s11 = inlined_call_operand.vmem [shape: f32[2,1], index: 11, kind: output, shape index: {}]  }
   0x1   :  { %v299_v0 = vld [vmem:[%s7167_s3] sm:$0xff]  ;;  %v300_v1 = vld [vmem:[%s7167_s3 + $0x8] sm:$0xff]  ;;  %360 = vmatprep.mubr.bf16.mxu0 %v5435_v2  ;;  %401 = vmatprep.mubr.bf16.mxu1 %v5435_v2  ;;  %v413_v45 = vunpack.c.l.s4 %v5436_v44  ;;  %v415_v46 = vlaneseq  ;;  %vm4080_vm14 = vcmask 1041408   ;;  %vm4104_vm15 = vcmask 1024  }
   0x2   :  { %v4111_v3 = vcombine.high %v299_v0, %v299_v0  ;;  %v4113_v4 = vcombine.high %v300_v1, %v300_v1  ;;  %v4110_v5 = vcombine.low %v299_v0, %v299_v0  ;;  %v4112_v6 = vcombine.low %v300_v1, %v300_v1  ;;  %v298_v7 = vld [vmem:[%s7168_s1] sm:$0x1]  ;;  %v4664_v8 = vld [vmem:[%s7169_s2 + $0x4] ss:$16 sps:$4 sm:$0xff]  }
   0x3   :  { %v4662_v11 = vld [vmem:[%s7169_s2] ss:$16 sps:$4 sm:$0xff]   ;;  %v4667_v12 = vld [vmem:[%s7169_s2 + $0x204] ss:$16 sps:$4 sm:$0xff]   ;;  %v414_v51 = vunpack.c.0.s8 %v413_v45  ;;  %v5620_v52 = vshrl.u32 %v415_v46, 7 }
   0x4   :  { %4114 = vmatprep.subr.msk.bf16.mxu0 %vm315_vm0, %v4111_v3  ;;  %4116 = vmatprep.subr.msk.bf16.mxu1 %vm315_vm0, %v4113_v4  ;;  %v317_v9 = vsel %vm315_vm0, %v4110_v5, 0  ;;  %v323_v10 = vsel %vm315_vm0, %v4112_v6, 0  ;;  %v4665_v13 = vld [vmem:[%s7169_s2 + $0x200] ss:$16 sps:$4 sm:$0xff]   ;;  %v4670_v14 = vld [vmem:[%s7169_s2 + $0x24] ss:$16 sps:$4 sm:$0xff]  }
   0x5   :  { %329 = vmatpush1.bf16.msra.mxu0 %v317_v9  ;;  %370 = vmatpush1.bf16.msra.mxu1 %v323_v10  ;;  %v4673_v15 = vld [vmem:[%s7169_s2 + $0x224] ss:$16 sps:$4 sm:$0xff]   ;;  %v4668_v16 = vld [vmem:[%s7169_s2 + $0x20] ss:$16 sps:$4 sm:$0xff]   ;;  %v417_v57 = vsub.s32 %v414_v51, %v5620_v52 }
   0x6   :  { %1748 = vmatprep.subr.bf16.mxu0 %v4664_v8  ;;  %1789 = vmatprep.subr.bf16.mxu1 %v4667_v12  ;;  %v4671_v17 = vld [vmem:[%s7169_s2 + $0x220] ss:$16 sps:$4 sm:$0xff]   ;;  %v4676_v18 = vld [vmem:[%s7169_s2 + $0x44] ss:$16 sps:$4 sm:$0xff]  }
   0x7   :  { %v4679_v19 = vld [vmem:[%s7169_s2 + $0x244] ss:$16 sps:$4 sm:$0xff]   ;;  %v4674_v20 = vld [vmem:[%s7169_s2 + $0x40] ss:$16 sps:$4 sm:$0xff]  }
   0x8   :  { %4115 = vmatmul.mubr.msk.bf16.vlgmr.msra.gmra.mrb[0].mxu0 %vm311_vm1, %v298_v7  ;;  %4117 = vmatmul.mubr.msk.bf16.vlgmr.msra.gmra.mrb[0].mxu1 %vm311_vm1, %v298_v7  ;;  %v4677_v21 = vld [vmem:[%s7169_s2 + $0x240] ss:$16 sps:$4 sm:$0xff]   ;;  %v4682_v22 = vld [vmem:[%s7169_s2 + $0x64] ss:$16 sps:$4 sm:$0xff]  }
   0x9   :  { %1749 = vmatpush1.bf16.msra.mxu0 %v4662_v11  ;;  %1790 = vmatpush1.bf16.msra.mxu1 %v4665_v13  ;;  %v4685_v23 = vld [vmem:[%s7169_s2 + $0x264] ss:$16 sps:$4 sm:$0xff]   ;;  %v4680_v24 = vld [vmem:[%s7169_s2 + $0x60] ss:$16 sps:$4 sm:$0xff]  }
   0xa   :  { %1750 = vmatprep.subr.bf16.mxu0 %v4670_v14  ;;  %1791 = vmatprep.subr.bf16.mxu1 %v4673_v15  ;;  %v4683_v25 = vld [vmem:[%s7169_s2 + $0x260] ss:$16 sps:$4 sm:$0xff]   ;;  %v4688_v26 = vld [vmem:[%s7169_s2 + $0x84] ss:$16 sps:$4 sm:$0xff]  }
   0xb   :  { %v4691_v27 = vld [vmem:[%s7169_s2 + $0x284] ss:$16 sps:$4 sm:$0xff]   ;;  %v4686_v28 = vld [vmem:[%s7169_s2 + $0x80] ss:$16 sps:$4 sm:$0xff]  }
   0xc   :  { %v4689_v29 = vld [vmem:[%s7169_s2 + $0x280] ss:$16 sps:$4 sm:$0xff]   ;;  %v4694_v30 = vld [vmem:[%s7169_s2 + $0xa4] ss:$16 sps:$4 sm:$0xff]  }
   0xd   :  { %1751 = vmatpush1.bf16.msra.mxu0 %v4668_v16  ;;  %1792 = vmatpush1.bf16.msra.mxu1 %v4671_v17  ;;  %v4697_v31 = vld [vmem:[%s7169_s2 + $0x2a4] ss:$16 sps:$4 sm:$0xff]   ;;  %v4692_v32 = vld [vmem:[%s7169_s2 + $0xa0] ss:$16 sps:$4 sm:$0xff]  }
   0xe   :  { %1752 = vmatprep.subr.bf16.mxu0 %v4676_v18  ;;  %1793 = vmatprep.subr.bf16.mxu1 %v4679_v19  ;;  %v4695_v33 = vld [vmem:[%s7169_s2 + $0x2a0] ss:$16 sps:$4 sm:$0xff]   ;;  %v4700_v34 = vld [vmem:[%s7169_s2 + $0xc4] ss:$16 sps:$4 sm:$0xff]  }
   0xf   :  { %v4703_v35 = vld [vmem:[%s7169_s2 + $0x2c4] ss:$16 sps:$4 sm:$0xff]   ;;  %v4698_v36 = vld [vmem:[%s7169_s2 + $0xc0] ss:$16 sps:$4 sm:$0xff]  }
  0x10   :  { %v4701_v37 = vld [vmem:[%s7169_s2 + $0x2c0] ss:$16 sps:$4 sm:$0xff]   ;;  %v4706_v38 = vld [vmem:[%s7169_s2 + $0xe4] ss:$16 sps:$4 sm:$0xff]  }
  0x11   :  { %1753 = vmatpush1.bf16.msra.mxu0 %v4674_v20  ;;  %1794 = vmatpush1.bf16.msra.mxu1 %v4677_v21  ;;  %v4709_v39 = vld [vmem:[%s7169_s2 + $0x2e4] ss:$16 sps:$4 sm:$0xff]   ;;  %v4704_v40 = vld [vmem:[%s7169_s2 + $0xe0] ss:$16 sps:$4 sm:$0xff]  }
  0x12   :  { %1754 = vmatprep.subr.bf16.mxu0 %v4682_v22  ;;  %1795 = vmatprep.subr.bf16.mxu1 %v4685_v23  ;;  %v4707_v41 = vld [vmem:[%s7169_s2 + $0x2e0] ss:$16 sps:$4 sm:$0xff]   ;;  %v4712_v42 = vld [vmem:[%s7169_s2 + $0x104] ss:$16 sps:$4 sm:$0xff]  }
  0x13   :  { %v4715_v43 = vld [vmem:[%s7169_s2 + $0x304] ss:$16 sps:$4 sm:$0xff]   ;;  %v4710_v47 = vld [vmem:[%s7169_s2 + $0x100] ss:$16 sps:$4 sm:$0xff]  }
  0x14   :  { %v4713_v48 = vld [vmem:[%s7169_s2 + $0x300] ss:$16 sps:$4 sm:$0xff]   ;;  %v4718_v49 = vld [vmem:[%s7169_s2 + $0x124] ss:$16 sps:$4 sm:$0xff]  }
  0x15   :  { %1755 = vmatpush1.bf16.msra.mxu0 %v4680_v24  ;;  %1796 = vmatpush1.bf16.msra.mxu1 %v4683_v25  ;;  %v4721_v50 = vld [vmem:[%s7169_s2 + $0x324] ss:$16 sps:$4 sm:$0xff]   ;;  %v4716_v53 = vld [vmem:[%s7169_s2 + $0x120] ss:$16 sps:$4 sm:$0xff]  }
  0x16   :  { %1756 = vmatprep.subr.bf16.mxu0 %v4688_v26  ;;  %1797 = vmatprep.subr.bf16.mxu1 %v4691_v27  ;;  %v4719_v54 = vld [vmem:[%s7169_s2 + $0x320] ss:$16 sps:$4 sm:$0xff]   ;;  %v4724_v55 = vld [vmem:[%s7169_s2 + $0x144] ss:$16 sps:$4 sm:$0xff]  }
  0x17   :  { %v4727_v56 = vld [vmem:[%s7169_s2 + $0x344] ss:$16 sps:$4 sm:$0xff]   ;;  %v4722_v58 = vld [vmem:[%s7169_s2 + $0x140] ss:$16 sps:$4 sm:$0xff]  }
  0x18   :  { %v4725_v59 = vld [vmem:[%s7169_s2 + $0x340] ss:$16 sps:$4 sm:$0xff]   ;;  %v4730_v61 = vld [vmem:[%s7169_s2 + $0x164] ss:$16 sps:$4 sm:$0xff]  }
  0x19   :  { %1757 = vmatpush1.bf16.msra.mxu0 %v4686_v28  ;;  %1798 = vmatpush1.bf16.msra.mxu1 %v4689_v29  ;;  %v41_v60 = vld [vmem:[%s7170_s0] sm:$0xff] }
  0x1a   :  { %1758 = vmatprep.subr.bf16.mxu0 %v4694_v30  ;;  %1799 = vmatprep.subr.bf16.mxu1 %v4697_v31  ;;  %v4733_v62 = vld [vmem:[%s7169_s2 + $0x364] ss:$16 sps:$4 sm:$0xff]   ;;  %v418_v63 = vrot.slane %v41_v60, %v417_v57  ;;  %v411_v0 = vcombine.high %v41_v60, %v41_v60  ;;  %v4728_v1 = vld [vmem:[%s7169_s2 + $0x160] ss:$16 sps:$4 sm:$0xff]  }
  0x1b   :  { %v4731_v3 = vld [vmem:[%s7169_s2 + $0x360] ss:$16 sps:$4 sm:$0xff]   ;;  %v4736_v5 = vld [vmem:[%s7169_s2 + $0x184] ss:$16 sps:$4 sm:$0xff]  }
  0x1c   :  { %v426_v2 = vcombine.high %v418_v63, %v418_v63  ;;  %v425_v4 = vrot.slane %v411_v0, %v417_v57  ;;  %v4739_v6 = vld [vmem:[%s7169_s2 + $0x384] ss:$16 sps:$4 sm:$0xff]   ;;  %v4734_v9 = vld [vmem:[%s7169_s2 + $0x180] ss:$16 sps:$4 sm:$0xff]   ;;  %v5711_v24 = vrot.slane %v418_v63, %v417_v57 }
  0x1d   :  { %1759 = vmatpush1.bf16.msra.mxu0 %v4692_v32  ;;  %1800 = vmatpush1.bf16.msra.mxu1 %v4695_v33  ;;  %v4737_v11 = vld [vmem:[%s7169_s2 + $0x380] ss:$16 sps:$4 sm:$0xff]   ;;  %v4742_v12 = vld [vmem:[%s7169_s2 + $0x1a4] ss:$16 sps:$4 sm:$0xff]  }
  0x1e   :  { %1760 = vmatprep.subr.bf16.mxu0 %v4700_v34  ;;  %1801 = vmatprep.subr.bf16.mxu1 %v4703_v35  ;;  %v5662_v7 = vrot.slane %v426_v2, %v417_v57  ;;  %v5664_v8 = vrot.slane %v425_v4, %v417_v57  ;;  %v4745_v13 = vld [vmem:[%s7169_s2 + $0x3a4] ss:$16 sps:$4 sm:$0xff]   ;;  %v4740_v14 = vld [vmem:[%s7169_s2 + $0x1a0] ss:$16 sps:$4 sm:$0xff]   ;;  %v427_v22 = vcombine.high %v425_v4, %v425_v4 }
  0x1f   :  { %v4743_v15 = vld [vmem:[%s7169_s2 + $0x3a0] ss:$16 sps:$4 sm:$0xff]   ;;  %v4748_v16 = vld [vmem:[%s7169_s2 + $0x1c4] ss:$16 sps:$4 sm:$0xff]   ;;  %v5726_v29 = vcombine.high %v5711_v24, %v5711_v24 }
  0x20   :  { %1780 = vmatprep.mubr.bf16.mxu0 %v5662_v7  ;;  %v5672_v10 = vcombine.high %v5662_v7, %v5662_v7  ;;  %v4751_v17 = vld [vmem:[%s7169_s2 + $0x3c4] ss:$16 sps:$4 sm:$0xff]   ;;  %v4746_v18 = vld [vmem:[%s7169_s2 + $0x1c0] ss:$16 sps:$4 sm:$0xff]   ;;  %v5722_v28 = vrot.slane %v427_v22, %v417_v57 }
  0x21   :  { %1761 = vmatpush1.bf16.msra.mxu0 %v4698_v36  ;;  %1802 = vmatpush1.bf16.msra.mxu1 %v4701_v37  ;;  %v4749_v19 = vld [vmem:[%s7169_s2 + $0x3c0] ss:$16 sps:$4 sm:$0xff]   ;;  %v4754_v20 = vld [vmem:[%s7169_s2 + $0x1e4] ss:$16 sps:$4 sm:$0xff]  }
  0x22   :  { %1762 = vmatprep.subr.bf16.mxu0 %v4706_v38  ;;  %1803 = vmatprep.subr.bf16.mxu1 %v4709_v39  ;;  %v4757_v21 = vld [vmem:[%s7169_s2 + $0x3e4] ss:$16 sps:$4 sm:$0xff]   ;;  %v4752_v23 = vld [vmem:[%s7169_s2 + $0x1e0] ss:$16 sps:$4 sm:$0xff]   ;;  %v5742_v34 = vcombine.high %v5722_v28, %v5722_v28 }
  0x23   :  { %1821 = vmatprep.mubr.bf16.mxu1 %v5672_v10  ;;  %v4755_v25 = vld [vmem:[%s7169_s2 + $0x3e0] ss:$16 sps:$4 sm:$0xff]   ;;  %v4760_v26 = vld [vmem:[%s7169_s2 + $0x404] ss:$16 sps:$4 sm:$0xff]  }
  0x24   :  { %v4763_v27 = vld [vmem:[%s7169_s2 + $0x604] ss:$16 sps:$4 sm:$0xff]   ;;  %v4758_v30 = vld [vmem:[%s7169_s2 + $0x400] ss:$16 sps:$4 sm:$0xff]  }
  0x25   :  { %1763 = vmatpush1.bf16.msra.mxu0 %v4704_v40  ;;  %1804 = vmatpush1.bf16.msra.mxu1 %v4707_v41  ;;  %v4761_v31 = vld [vmem:[%s7169_s2 + $0x600] ss:$16 sps:$4 sm:$0xff]   ;;  %v4766_v32 = vld [vmem:[%s7169_s2 + $0x424] ss:$16 sps:$4 sm:$0xff]  }
  0x26   :  { %1764 = vmatprep.subr.bf16.mxu0 %v4712_v42  ;;  %1805 = vmatprep.subr.bf16.mxu1 %v4715_v43  ;;  %v4769_v33 = vld [vmem:[%s7169_s2 + $0x624] ss:$16 sps:$4 sm:$0xff]   ;;  %v4764_v35 = vld [vmem:[%s7169_s2 + $0x420] ss:$16 sps:$4 sm:$0xff]  }
  0x27   :  { %v4767_v36 = vld [vmem:[%s7169_s2 + $0x620] ss:$16 sps:$4 sm:$0xff]   ;;  %v4772_v37 = vld [vmem:[%s7169_s2 + $0x444] ss:$16 sps:$4 sm:$0xff]  }
  0x28   :  { %v4775_v38 = vld [vmem:[%s7169_s2 + $0x644] ss:$16 sps:$4 sm:$0xff]   ;;  %v4770_v39 = vld [vmem:[%s7169_s2 + $0x440] ss:$16 sps:$4 sm:$0xff]  }
  0x29   :  { %1765 = vmatpush1.bf16.msra.mxu0 %v4710_v47  ;;  %1806 = vmatpush1.bf16.msra.mxu1 %v4713_v48  ;;  %v4773_v40 = vld [vmem:[%s7169_s2 + $0x640] ss:$16 sps:$4 sm:$0xff]   ;;  %v4778_v41 = vld [vmem:[%s7169_s2 + $0x464] ss:$16 sps:$4 sm:$0xff]  }
  0x2a   :  { %1766 = vmatprep.subr.bf16.mxu0 %v4718_v49  ;;  %1807 = vmatprep.subr.bf16.mxu1 %v4721_v50  ;;  %v4781_v42 = vld [vmem:[%s7169_s2 + $0x664] ss:$16 sps:$4 sm:$0xff]   ;;  %v4776_v43 = vld [vmem:[%s7169_s2 + $0x460] ss:$16 sps:$4 sm:$0xff]  }
  0x2b   :  { %v4779_v44 = vld [vmem:[%s7169_s2 + $0x660] ss:$16 sps:$4 sm:$0xff]   ;;  %v4784_v45 = vld [vmem:[%s7169_s2 + $0x484] ss:$16 sps:$4 sm:$0xff]  }
  0x2c   :  { %v4787_v46 = vld [vmem:[%s7169_s2 + $0x684] ss:$16 sps:$4 sm:$0xff]   ;;  %v4782_v47 = vld [vmem:[%s7169_s2 + $0x480] ss:$16 sps:$4 sm:$0xff]  }
  0x2d   :  { %1767 = vmatpush1.bf16.msra.mxu0 %v4716_v53  ;;  %1808 = vmatpush1.bf16.msra.mxu1 %v4719_v54  ;;  %v4785_v48 = vld [vmem:[%s7169_s2 + $0x680] ss:$16 sps:$4 sm:$0xff]   ;;  %v4790_v49 = vld [vmem:[%s7169_s2 + $0x4a4] ss:$16 sps:$4 sm:$0xff]  }
  0x2e   :  { %1768 = vmatprep.subr.bf16.mxu0 %v4724_v55  ;;  %1809 = vmatprep.subr.bf16.mxu1 %v4727_v56  ;;  %v4793_v50 = vld [vmem:[%s7169_s2 + $0x6a4] ss:$16 sps:$4 sm:$0xff]   ;;  %v4788_v51 = vld [vmem:[%s7169_s2 + $0x4a0] ss:$16 sps:$4 sm:$0xff]  }
  0x2f   :  { %v4791_v53 = vld [vmem:[%s7169_s2 + $0x6a0] ss:$16 sps:$4 sm:$0xff]   ;;  %v4796_v54 = vld [vmem:[%s7169_s2 + $0x4c4] ss:$16 sps:$4 sm:$0xff]  }
  0x30   :  { %v4799_v55 = vld [vmem:[%s7169_s2 + $0x6c4] ss:$16 sps:$4 sm:$0xff]   ;;  %v4794_v56 = vld [vmem:[%s7169_s2 + $0x4c0] ss:$16 sps:$4 sm:$0xff]  }
  0x31   :  { %1769 = vmatpush1.bf16.msra.mxu0 %v4722_v58  ;;  %1810 = vmatpush1.bf16.msra.mxu1 %v4725_v59  ;;  %v4797_v57 = vld [vmem:[%s7169_s2 + $0x6c0] ss:$16 sps:$4 sm:$0xff]   ;;  %v4802_v58 = vld [vmem:[%s7169_s2 + $0x4e4] ss:$16 sps:$4 sm:$0xff]  }
  0x32   :  { %1770 = vmatprep.subr.bf16.mxu0 %v4730_v61  ;;  %1811 = vmatprep.subr.bf16.mxu1 %v4733_v62  ;;  %v4805_v59 = vld [vmem:[%s7169_s2 + $0x6e4] ss:$16 sps:$4 sm:$0xff]   ;;  %v4800_v60 = vld [vmem:[%s7169_s2 + $0x4e0] ss:$16 sps:$4 sm:$0xff]  }
  0x33   :  { %v4803_v61 = vld [vmem:[%s7169_s2 + $0x6e0] ss:$16 sps:$4 sm:$0xff]   ;;  %v4808_v62 = vld [vmem:[%s7169_s2 + $0x504] ss:$16 sps:$4 sm:$0xff]  }
  0x34   :  { %v4811_v63 = vld [vmem:[%s7169_s2 + $0x704] ss:$16 sps:$4 sm:$0xff]   ;;  %v4806_v0 = vld [vmem:[%s7169_s2 + $0x500] ss:$16 sps:$4 sm:$0xff]  }
  0x35   :  { %1771 = vmatpush1.bf16.msra.mxu0 %v4728_v1  ;;  %1812 = vmatpush1.bf16.msra.mxu1 %v4731_v3  ;;  %v4809_v1 = vld [vmem:[%s7169_s2 + $0x700] ss:$16 sps:$4 sm:$0xff]   ;;  %v4814_v2 = vld [vmem:[%s7169_s2 + $0x524] ss:$16 sps:$4 sm:$0xff]  }
  0x36   :  { %1772 = vmatprep.subr.bf16.mxu0 %v4736_v5  ;;  %1813 = vmatprep.subr.bf16.mxu1 %v4739_v6  ;;  %v4817_v3 = vld [vmem:[%s7169_s2 + $0x724] ss:$16 sps:$4 sm:$0xff]   ;;  %v4812_v4 = vld [vmem:[%s7169_s2 + $0x520] ss:$16 sps:$4 sm:$0xff]  }
  0x37   :  { %v4815_v5 = vld [vmem:[%s7169_s2 + $0x720] ss:$16 sps:$4 sm:$0xff]   ;;  %v4820_v6 = vld [vmem:[%s7169_s2 + $0x544] ss:$16 sps:$4 sm:$0xff]  }
  0x38   :  { %v4841_v22 = vld [vmem:[%s7169_s2 + $0x7a4] ss:$16 sps:$4 sm:$0xff]  }
  0x39   :  { %1773 = vmatpush1.bf16.msra.mxu0 %v4734_v9  ;;  %1814 = vmatpush1.bf16.msra.mxu1 %v4737_v11  ;;  %v4823_v9 = vld [vmem:[%s7169_s2 + $0x744] ss:$16 sps:$4 sm:$0xff]   ;;  %v4818_v11 = vld [vmem:[%s7169_s2 + $0x540] ss:$16 sps:$4 sm:$0xff]  }
  0x3a   :  { %1774 = vmatprep.subr.bf16.mxu0 %v4742_v12  ;;  %1815 = vmatprep.subr.bf16.mxu1 %v4745_v13  ;;  %v4821_v12 = vld [vmem:[%s7169_s2 + $0x740] ss:$16 sps:$4 sm:$0xff]   ;;  %v4826_v13 = vld [vmem:[%s7169_s2 + $0x564] ss:$16 sps:$4 sm:$0xff]  }
  0x3d   :  { %1775 = vmatpush1.bf16.msra.mxu0 %v4740_v14  ;;  %1816 = vmatpush1.bf16.msra.mxu1 %v4743_v15  ;;  %v4829_v14 = vld [vmem:[%s7169_s2 + $0x764] ss:$16 sps:$4 sm:$0xff]   ;;  %v4824_v15 = vld [vmem:[%s7169_s2 + $0x560] ss:$16 sps:$4 sm:$0xff]  }
  0x3e   :  { %1776 = vmatprep.subr.bf16.mxu0 %v4748_v16  ;;  %1817 = vmatprep.subr.bf16.mxu1 %v4751_v17  ;;  %v4827_v16 = vld [vmem:[%s7169_s2 + $0x760] ss:$16 sps:$4 sm:$0xff]   ;;  %v4832_v17 = vld [vmem:[%s7169_s2 + $0x584] ss:$16 sps:$4 sm:$0xff]  }
  0x41   :  { %1777 = vmatpush1.bf16.msra.mxu0 %v4746_v18  ;;  %1818 = vmatpush1.bf16.msra.mxu1 %v4749_v19  ;;  %v4835_v18 = vld [vmem:[%s7169_s2 + $0x784] ss:$16 sps:$4 sm:$0xff]   ;;  %v4830_v19 = vld [vmem:[%s7169_s2 + $0x580] ss:$16 sps:$4 sm:$0xff]  }
  0x42   :  { %1778 = vmatprep.subr.bf16.mxu0 %v4754_v20  ;;  %1819 = vmatprep.subr.bf16.mxu1 %v4757_v21  ;;  %v4833_v20 = vld [vmem:[%s7169_s2 + $0x780] ss:$16 sps:$4 sm:$0xff]   ;;  %v4838_v21 = vld [vmem:[%s7169_s2 + $0x5a4] ss:$16 sps:$4 sm:$0xff]  }
  0x45   :  { %1779 = vmatpush1.bf16.msra.mxu0 %v4752_v23  ;;  %1820 = vmatpush1.bf16.msra.mxu1 %v4755_v25  ;;  %v4836_v23 = vld [vmem:[%s7169_s2 + $0x5a0] ss:$16 sps:$4 sm:$0xff]  }
  0x46   :  { %1830 = vmatprep.subr.bf16.mxu0 %v4760_v26  ;;  %1871 = vmatprep.subr.bf16.mxu1 %v4763_v27  ;;  %v4839_v25 = vld [vmem:[%s7169_s2 + $0x7a0] ss:$16 sps:$4 sm:$0xff]   ;;  %v4844_v26 = vld [vmem:[%s7169_s2 + $0x5c4] ss:$16 sps:$4 sm:$0xff]  }
  0x47   :  { %v4847_v27 = vld [vmem:[%s7169_s2 + $0x7c4] ss:$16 sps:$4 sm:$0xff]  }
  0x48   :  { %1781 = vmatmul.mubr.bf16.vlgmr.msra.gmra.mrb[4].mxu0 %v5711_v24  ;;  %1822 = vmatmul.mubr.bf16.vlgmr.msra.gmra.mrb[4].mxu1 %v5726_v29 }
  0x49   :  { %1831 = vmatpush1.bf16.msra.mxu0 %v4758_v30  ;;  %1872 = vmatpush1.bf16.msra.mxu1 %v4761_v31  ;;  %v4842_v30 = vld [vmem:[%s7169_s2 + $0x5c0] ss:$16 sps:$4 sm:$0xff]  }
  0x4a   :  { %1832 = vmatprep.subr.bf16.mxu0 %v4766_v32  ;;  %1873 = vmatprep.subr.bf16.mxu1 %v4769_v33  ;;  %v4845_v31 = vld [vmem:[%s7169_s2 + $0x7c0] ss:$16 sps:$4 sm:$0xff]   ;;  %v4850_v32 = vld [vmem:[%s7169_s2 + $0x5e4] ss:$16 sps:$4 sm:$0xff]  }
  0x4b   :  { %1862 = vmatprep.mubr.bf16.mxu0 %v5722_v28  ;;  %1903 = vmatprep.mubr.bf16.mxu1 %v5742_v34  ;;  %v4853_v33 = vld [vmem:[%s7169_s2 + $0x7e4] ss:$16 sps:$4 sm:$0xff]  }
  0x4d   :  { %1833 = vmatpush1.bf16.msra.mxu0 %v4764_v35  ;;  %1874 = vmatpush1.bf16.msra.mxu1 %v4767_v36  ;;  %v4848_v35 = vld [vmem:[%s7169_s2 + $0x5e0] ss:$16 sps:$4 sm:$0xff]  }
  0x4e   :  { %1834 = vmatprep.subr.bf16.mxu0 %v4772_v37  ;;  %1875 = vmatprep.subr.bf16.mxu1 %v4775_v38  ;;  %v4851_v36 = vld [vmem:[%s7169_s2 + $0x7e0] ss:$16 sps:$4 sm:$0xff]   ;;  %v4857_v37 = vld [vmem:[%s7169_s2 + $0xc] ss:$16 sps:$4 sm:$0xff]  }
  0x4f   :  { %v4860_v38 = vld [vmem:[%s7169_s2 + $0x20c] ss:$16 sps:$4 sm:$0xff]  }
  0x51   :  { %1835 = vmatpush1.bf16.msra.mxu0 %v4770_v39  ;;  %1876 = vmatpush1.bf16.msra.mxu1 %v4773_v40  ;;  %v5930_v39 = vcombine.high %v5664_v8, %v5664_v8  ;;  %v4855_v40 = vld [vmem:[%s7169_s2 + $0x8] ss:$16 sps:$4 sm:$0xff]  }
  0x52   :  { %1836 = vmatprep.subr.bf16.mxu0 %v4778_v41  ;;  %1877 = vmatprep.subr.bf16.mxu1 %v4781_v42  ;;  %v4858_v41 = vld [vmem:[%s7169_s2 + $0x208] ss:$16 sps:$4 sm:$0xff]   ;;  %v4863_v42 = vld [vmem:[%s7169_s2 + $0x2c] ss:$16 sps:$4 sm:$0xff]  }
  0x55   :  { %1837 = vmatpush1.bf16.msra.mxu0 %v4776_v43  ;;  %1878 = vmatpush1.bf16.msra.mxu1 %v4779_v44  ;;  %v4866_v43 = vld [vmem:[%s7169_s2 + $0x22c] ss:$16 sps:$4 sm:$0xff]   ;;  %v4861_v44 = vld [vmem:[%s7169_s2 + $0x28] ss:$16 sps:$4 sm:$0xff]  }
  0x56   :  { %1838 = vmatprep.subr.bf16.mxu0 %v4784_v45  ;;  %1879 = vmatprep.subr.bf16.mxu1 %v4787_v46  ;;  %v4864_v45 = vld [vmem:[%s7169_s2 + $0x228] ss:$16 sps:$4 sm:$0xff]   ;;  %v4869_v46 = vld [vmem:[%s7169_s2 + $0x4c] ss:$16 sps:$4 sm:$0xff]  }
  0x59   :  { %1839 = vmatpush1.bf16.msra.mxu0 %v4782_v47  ;;  %1880 = vmatpush1.bf16.msra.mxu1 %v4785_v48  ;;  %v4872_v47 = vld [vmem:[%s7169_s2 + $0x24c] ss:$16 sps:$4 sm:$0xff]   ;;  %v4867_v48 = vld [vmem:[%s7169_s2 + $0x48] ss:$16 sps:$4 sm:$0xff]  }
  0x5a   :  { %1840 = vmatprep.subr.bf16.mxu0 %v4790_v49  ;;  %1881 = vmatprep.subr.bf16.mxu1 %v4793_v50  ;;  %v4870_v49 = vld [vmem:[%s7169_s2 + $0x248] ss:$16 sps:$4 sm:$0xff]   ;;  %v4875_v50 = vld [vmem:[%s7169_s2 + $0x6c] ss:$16 sps:$4 sm:$0xff]  }
  0x5d   :  { %1841 = vmatpush1.bf16.msra.mxu0 %v4788_v51  ;;  %1882 = vmatpush1.bf16.msra.mxu1 %v4791_v53  ;;  %v4876_v51 = vld [vmem:[%s7169_s2 + $0x268] ss:$16 sps:$4 sm:$0xff]   ;;  %v4881_v53 = vld [vmem:[%s7169_s2 + $0x8c] ss:$16 sps:$4 sm:$0xff]  }
  0x5e   :  { %1842 = vmatprep.subr.bf16.mxu0 %v4796_v54  ;;  %1883 = vmatprep.subr.bf16.mxu1 %v4799_v55  ;;  %v4884_v54 = vld [vmem:[%s7169_s2 + $0x28c] ss:$16 sps:$4 sm:$0xff]   ;;  %v4879_v55 = vld [vmem:[%s7169_s2 + $0x88] ss:$16 sps:$4 sm:$0xff]  }
  0x61   :  { %1843 = vmatpush1.bf16.msra.mxu0 %v4794_v56  ;;  %1884 = vmatpush1.bf16.msra.mxu1 %v4797_v57  ;;  %v4882_v56 = vld [vmem:[%s7169_s2 + $0x288] ss:$16 sps:$4 sm:$0xff]   ;;  %v4887_v57 = vld [vmem:[%s7169_s2 + $0xac] ss:$16 sps:$4 sm:$0xff]  }
  0x62   :  { %1844 = vmatprep.subr.bf16.mxu0 %v4802_v58  ;;  %1885 = vmatprep.subr.bf16.mxu1 %v4805_v59  ;;  %v4890_v58 = vld [vmem:[%s7169_s2 + $0x2ac] ss:$16 sps:$4 sm:$0xff]   ;;  %v4885_v59 = vld [vmem:[%s7169_s2 + $0xa8] ss:$16 sps:$4 sm:$0xff]  }
  0x65   :  { %1845 = vmatpush1.bf16.msra.mxu0 %v4800_v60  ;;  %1886 = vmatpush1.bf16.msra.mxu1 %v4803_v61  ;;  %v4888_v60 = vld [vmem:[%s7169_s2 + $0x2a8] ss:$16 sps:$4 sm:$0xff]   ;;  %v4893_v61 = vld [vmem:[%s7169_s2 + $0xcc] ss:$16 sps:$4 sm:$0xff]  }
  0x66   :  { %1846 = vmatprep.subr.bf16.mxu0 %v4808_v62  ;;  %1887 = vmatprep.subr.bf16.mxu1 %v4811_v63  ;;  %v4896_v62 = vld [vmem:[%s7169_s2 + $0x2cc] ss:$16 sps:$4 sm:$0xff]   ;;  %v4891_v63 = vld [vmem:[%s7169_s2 + $0xc8] ss:$16 sps:$4 sm:$0xff]  }
  0x69   :  { %1847 = vmatpush1.bf16.msra.mxu0 %v4806_v0  ;;  %1888 = vmatpush1.bf16.msra.mxu1 %v4809_v1  ;;  %v4894_v0 = vld [vmem:[%s7169_s2 + $0x2c8] ss:$16 sps:$4 sm:$0xff]   ;;  %v4899_v1 = vld [vmem:[%s7169_s2 + $0xec] ss:$16 sps:$4 sm:$0xff]  }
  0x6a   :  { %1848 = vmatprep.subr.bf16.mxu0 %v4814_v2  ;;  %1889 = vmatprep.subr.bf16.mxu1 %v4817_v3  ;;  %v4902_v2 = vld [vmem:[%s7169_s2 + $0x2ec] ss:$16 sps:$4 sm:$0xff]   ;;  %v4897_v3 = vld [vmem:[%s7169_s2 + $0xe8] ss:$16 sps:$4 sm:$0xff]  }
  0x6d   :  { %1849 = vmatpush1.bf16.msra.mxu0 %v4812_v4  ;;  %1890 = vmatpush1.bf16.msra.mxu1 %v4815_v5  ;;  %v4900_v4 = vld [vmem:[%s7169_s2 + $0x2e8] ss:$16 sps:$4 sm:$0xff]   ;;  %v4905_v5 = vld [vmem:[%s7169_s2 + $0x10c] ss:$16 sps:$4 sm:$0xff]  }
  0x6e   :  { %1850 = vmatprep.subr.bf16.mxu0 %v4820_v6  ;;  %1891 = vmatprep.subr.bf16.mxu1 %v4823_v9  ;;  %v4908_v6 = vld [vmem:[%s7169_s2 + $0x30c] ss:$16 sps:$4 sm:$0xff]   ;;  %v4903_v9 = vld [vmem:[%s7169_s2 + $0x108] ss:$16 sps:$4 sm:$0xff]  }
  0x71   :  { %1851 = vmatpush1.bf16.msra.mxu0 %v4818_v11  ;;  %1892 = vmatpush1.bf16.msra.mxu1 %v4821_v12  ;;  %v4906_v11 = vld [vmem:[%s7169_s2 + $0x308] ss:$16 sps:$4 sm:$0xff]   ;;  %v4911_v12 = vld [vmem:[%s7169_s2 + $0x12c] ss:$16 sps:$4 sm:$0xff]  }
  0x72   :  { %1852 = vmatprep.subr.bf16.mxu0 %v4826_v13  ;;  %1893 = vmatprep.subr.bf16.mxu1 %v4829_v14  ;;  %v4914_v13 = vld [vmem:[%s7169_s2 + $0x32c] ss:$16 sps:$4 sm:$0xff]   ;;  %v4909_v14 = vld [vmem:[%s7169_s2 + $0x128] ss:$16 sps:$4 sm:$0xff]  }
  0x75   :  { %1853 = vmatpush1.bf16.msra.mxu0 %v4824_v15  ;;  %1894 = vmatpush1.bf16.msra.mxu1 %v4827_v16  ;;  %v4912_v15 = vld [vmem:[%s7169_s2 + $0x328] ss:$16 sps:$4 sm:$0xff]   ;;  %v4917_v16 = vld [vmem:[%s7169_s2 + $0x14c] ss:$16 sps:$4 sm:$0xff]  }
  0x76   :  { %1854 = vmatprep.subr.bf16.mxu0 %v4832_v17  ;;  %1895 = vmatprep.subr.bf16.mxu1 %v4835_v18  ;;  %v4920_v17 = vld [vmem:[%s7169_s2 + $0x34c] ss:$16 sps:$4 sm:$0xff]   ;;  %v4915_v18 = vld [vmem:[%s7169_s2 + $0x148] ss:$16 sps:$4 sm:$0xff]  }
  0x79   :  { %1855 = vmatpush1.bf16.msra.mxu0 %v4830_v19  ;;  %1896 = vmatpush1.bf16.msra.mxu1 %v4833_v20  ;;  %v4918_v19 = vld [vmem:[%s7169_s2 + $0x348] ss:$16 sps:$4 sm:$0xff]   ;;  %v4923_v20 = vld [vmem:[%s7169_s2 + $0x16c] ss:$16 sps:$4 sm:$0xff]  }
  0x7a   :  { %1856 = vmatprep.subr.bf16.mxu0 %v4838_v21  ;;  %1897 = vmatprep.subr.bf16.mxu1 %v4841_v22  ;;  %v4926_v21 = vld [vmem:[%s7169_s2 + $0x36c] ss:$16 sps:$4 sm:$0xff]   ;;  %v4921_v22 = vld [vmem:[%s7169_s2 + $0x168] ss:$16 sps:$4 sm:$0xff]  }
  0x7d   :  { %1857 = vmatpush1.bf16.msra.mxu0 %v4836_v23  ;;  %1898 = vmatpush1.bf16.msra.mxu1 %v4839_v25  ;;  %v4924_v23 = vld [vmem:[%s7169_s2 + $0x368] ss:$16 sps:$4 sm:$0xff]   ;;  %v4929_v25 = vld [vmem:[%s7169_s2 + $0x18c] ss:$16 sps:$4 sm:$0xff]  }
  0x7e   :  { %1858 = vmatprep.subr.bf16.mxu0 %v4844_v26  ;;  %1899 = vmatprep.subr.bf16.mxu1 %v4847_v27  ;;  %v4932_v26 = vld [vmem:[%s7169_s2 + $0x38c] ss:$16 sps:$4 sm:$0xff]   ;;  %v4927_v27 = vld [vmem:[%s7169_s2 + $0x188] ss:$16 sps:$4 sm:$0xff]  }
  0x81   :  { %1859 = vmatpush1.bf16.msra.mxu0 %v4842_v30  ;;  %1900 = vmatpush1.bf16.msra.mxu1 %v4845_v31  ;;  %v4930_v30 = vld [vmem:[%s7169_s2 + $0x388] ss:$16 sps:$4 sm:$0xff]   ;;  %v4935_v31 = vld [vmem:[%s7169_s2 + $0x1ac] ss:$16 sps:$4 sm:$0xff]  }
  0x82   :  { %1860 = vmatprep.subr.bf16.mxu0 %v4850_v32  ;;  %1901 = vmatprep.subr.bf16.mxu1 %v4853_v33  ;;  %v4938_v32 = vld [vmem:[%s7169_s2 + $0x3ac] ss:$16 sps:$4 sm:$0xff]   ;;  %v4933_v33 = vld [vmem:[%s7169_s2 + $0x1a8] ss:$16 sps:$4 sm:$0xff]  }
  0x85   :  { %1861 = vmatpush1.bf16.msra.mxu0 %v4848_v35  ;;  %1902 = vmatpush1.bf16.msra.mxu1 %v4851_v36  ;;  %v4936_v35 = vld [vmem:[%s7169_s2 + $0x3a8] ss:$16 sps:$4 sm:$0xff]   ;;  %v4941_v36 = vld [vmem:[%s7169_s2 + $0x1cc] ss:$16 sps:$4 sm:$0xff]  }
  0x86   :  { %1912 = vmatprep.subr.bf16.mxu0 %v4857_v37  ;;  %1953 = vmatprep.subr.bf16.mxu1 %v4860_v38  ;;  %v4944_v37 = vld [vmem:[%s7169_s2 + $0x3cc] ss:$16 sps:$4 sm:$0xff]   ;;  %v4939_v38 = vld [vmem:[%s7169_s2 + $0x1c8] ss:$16 sps:$4 sm:$0xff]  }
  0x88   :  { %1863 = vmatmul.mubr.bf16.vlgmr.msra.gmra.mrb[8].mxu0 %v5664_v8  ;;  %1904 = vmatmul.mubr.bf16.vlgmr.msra.gmra.mrb[8].mxu1 %v5930_v39 }
  0x89   :  { %1913 = vmatpush1.bf16.msra.mxu0 %v4855_v40  ;;  %1954 = vmatpush1.bf16.msra.mxu1 %v4858_v41  ;;  %v4942_v40 = vld [vmem:[%s7169_s2 + $0x3c8] ss:$16 sps:$4 sm:$0xff]   ;;  %v4947_v41 = vld [vmem:[%s7169_s2 + $0x1ec] ss:$16 sps:$4 sm:$0xff]  }
  0x8a   :  { %1914 = vmatprep.subr.bf16.mxu0 %v4863_v42  ;;  %1955 = vmatprep.subr.bf16.mxu1 %v4866_v43  ;;  %v4950_v42 = vld [vmem:[%s7169_s2 + $0x3ec] ss:$16 sps:$4 sm:$0xff]   ;;  %v4945_v43 = vld [vmem:[%s7169_s2 + $0x1e8] ss:$16 sps:$4 sm:$0xff]  }
  0x8b   :  { %1944 = vmatprep.mubr.bf16.mxu0 %v5662_v7  ;;  %1985 = vmatprep.mubr.bf16.mxu1 %v5672_v10  ;;  %v4878_v7 = vld [vmem:[%s7169_s2 + $0x26c] ss:$16 sps:$4 sm:$0xff]   ;;  %v4873_v10 = vld [vmem:[%s7169_s2 + $0x68] ss:$16 sps:$4 sm:$0xff]  }
  0x8d   :  { %1915 = vmatpush1.bf16.msra.mxu0 %v4861_v44  ;;  %1956 = vmatpush1.bf16.msra.mxu1 %v4864_v45  ;;  %v4948_v44 = vld [vmem:[%s7169_s2 + $0x3e8] ss:$16 sps:$4 sm:$0xff]   ;;  %v4953_v45 = vld [vmem:[%s7169_s2 + $0x40c] ss:$16 sps:$4 sm:$0xff]  }
  0x8e   :  { %1916 = vmatprep.subr.bf16.mxu0 %v4869_v46  ;;  %1957 = vmatprep.subr.bf16.mxu1 %v4872_v47  ;;  %v4956_v46 = vld [vmem:[%s7169_s2 + $0x60c] ss:$16 sps:$4 sm:$0xff]   ;;  %v4951_v47 = vld [vmem:[%s7169_s2 + $0x408] ss:$16 sps:$4 sm:$0xff]  }
  0x91   :  { %1917 = vmatpush1.bf16.msra.mxu0 %v4867_v48  ;;  %1958 = vmatpush1.bf16.msra.mxu1 %v4870_v49  ;;  %v4954_v48 = vld [vmem:[%s7169_s2 + $0x608] ss:$16 sps:$4 sm:$0xff]   ;;  %v4959_v49 = vld [vmem:[%s7169_s2 + $0x42c] ss:$16 sps:$4 sm:$0xff]  }
  0x92   :  { %1918 = vmatprep.subr.bf16.mxu0 %v4875_v50  ;;  %1959 = vmatprep.subr.bf16.mxu1 %v4878_v7  ;;  %v4962_v50 = vld [vmem:[%s7169_s2 + $0x62c] ss:$16 sps:$4 sm:$0xff]   ;;  %v4957_v7 = vld [vmem:[%s7169_s2 + $0x428] ss:$16 sps:$4 sm:$0xff]  }
  0x95   :  { %1919 = vmatpush1.bf16.msra.mxu0 %v4873_v10  ;;  %1960 = vmatpush1.bf16.msra.mxu1 %v4876_v51  ;;  %v4960_v10 = vld [vmem:[%s7169_s2 + $0x628] ss:$16 sps:$4 sm:$0xff]   ;;  %v4965_v51 = vld [vmem:[%s7169_s2 + $0x44c] ss:$16 sps:$4 sm:$0xff]  }
  0x96   :  { %1920 = vmatprep.subr.bf16.mxu0 %v4881_v53  ;;  %1961 = vmatprep.subr.bf16.mxu1 %v4884_v54  ;;  %v4966_v53 = vld [vmem:[%s7169_s2 + $0x648] ss:$16 sps:$4 sm:$0xff]   ;;  %v4971_v54 = vld [vmem:[%s7169_s2 + $0x46c] ss:$16 sps:$4 sm:$0xff]  }
  0x99   :  { %1921 = vmatpush1.bf16.msra.mxu0 %v4879_v55  ;;  %1962 = vmatpush1.bf16.msra.mxu1 %v4882_v56  ;;  %v4972_v55 = vld [vmem:[%s7169_s2 + $0x668] ss:$16 sps:$4 sm:$0xff]   ;;  %v4977_v56 = vld [vmem:[%s7169_s2 + $0x48c] ss:$16 sps:$4 sm:$0xff]  }
  0x9a   :  { %1922 = vmatprep.subr.bf16.mxu0 %v4887_v57  ;;  %1963 = vmatprep.subr.bf16.mxu1 %v4890_v58  ;;  %v4980_v57 = vld [vmem:[%s7169_s2 + $0x68c] ss:$16 sps:$4 sm:$0xff]   ;;  %v4975_v58 = vld [vmem:[%s7169_s2 + $0x488] ss:$16 sps:$4 sm:$0xff]  }
  0x9d   :  { %1923 = vmatpush1.bf16.msra.mxu0 %v4885_v59  ;;  %1964 = vmatpush1.bf16.msra.mxu1 %v4888_v60  ;;  %v4978_v59 = vld [vmem:[%s7169_s2 + $0x688] ss:$16 sps:$4 sm:$0xff]   ;;  %v4983_v60 = vld [vmem:[%s7169_s2 + $0x4ac] ss:$16 sps:$4 sm:$0xff]  }
  0x9e   :  { %1924 = vmatprep.subr.bf16.mxu0 %v4893_v61  ;;  %1965 = vmatprep.subr.bf16.mxu1 %v4896_v62  ;;  %v4986_v61 = vld [vmem:[%s7169_s2 + $0x6ac] ss:$16 sps:$4 sm:$0xff]   ;;  %v4981_v62 = vld [vmem:[%s7169_s2 + $0x4a8] ss:$16 sps:$4 sm:$0xff]  }
  0xa1   :  { %1925 = vmatpush1.bf16.msra.mxu0 %v4891_v63  ;;  %1966 = vmatpush1.bf16.msra.mxu1 %v4894_v0  ;;  %v4984_v63 = vld [vmem:[%s7169_s2 + $0x6a8] ss:$16 sps:$4 sm:$0xff]   ;;  %v4989_v0 = vld [vmem:[%s7169_s2 + $0x4cc] ss:$16 sps:$4 sm:$0xff]  }
  0xa2   :  { %1926 = vmatprep.subr.bf16.mxu0 %v4899_v1  ;;  %1967 = vmatprep.subr.bf16.mxu1 %v4902_v2  ;;  %v4992_v1 = vld [vmem:[%s7169_s2 + $0x6cc] ss:$16 sps:$4 sm:$0xff]  }
  0xa5   :  { %1927 = vmatpush1.bf16.msra.mxu0 %v4897_v3  ;;  %1968 = vmatpush1.bf16.msra.mxu1 %v4900_v4  ;;  %v4987_v4 = vld [vmem:[%s7169_s2 + $0x4c8] ss:$16 sps:$4 sm:$0xff]  }
  0xa6   :  { %1928 = vmatprep.subr.bf16.mxu0 %v4905_v5  ;;  %1969 = vmatprep.subr.bf16.mxu1 %v4908_v6 }
  0xa9   :  { %1929 = vmatpush1.bf16.msra.mxu0 %v4903_v9  ;;  %1970 = vmatpush1.bf16.msra.mxu1 %v4906_v11  ;;  %v4990_v9 = vld [vmem:[%s7169_s2 + $0x6c8] ss:$16 sps:$4 sm:$0xff]  }
  0xaa   :  { %1930 = vmatprep.subr.bf16.mxu0 %v4911_v12  ;;  %1971 = vmatprep.subr.bf16.mxu1 %v4914_v13  ;;  %v4995_v13 = vld [vmem:[%s7169_s2 + $0x4ec] ss:$16 sps:$4 sm:$0xff]  }
  0xad   :  { %1931 = vmatpush1.bf16.msra.mxu0 %v4909_v14  ;;  %1972 = vmatpush1.bf16.msra.mxu1 %v4912_v15 }
  0xae   :  { %1932 = vmatprep.subr.bf16.mxu0 %v4917_v16  ;;  %1973 = vmatprep.subr.bf16.mxu1 %v4920_v17  ;;  %v4998_v16 = vld [vmem:[%s7169_s2 + $0x6ec] ss:$16 sps:$4 sm:$0xff]   ;;  %v4993_v17 = vld [vmem:[%s7169_s2 + $0x4e8] ss:$16 sps:$4 sm:$0xff]  }
  0xb1   :  { %1933 = vmatpush1.bf16.msra.mxu0 %v4915_v18  ;;  %1974 = vmatpush1.bf16.msra.mxu1 %v4918_v19  ;;  %v4996_v18 = vld [vmem:[%s7169_s2 + $0x6e8] ss:$16 sps:$4 sm:$0xff]   ;;  %v5001_v19 = vld [vmem:[%s7169_s2 + $0x50c] ss:$16 sps:$4 sm:$0xff]  }
  0xb2   :  { %1934 = vmatprep.subr.bf16.mxu0 %v4923_v20  ;;  %1975 = vmatprep.subr.bf16.mxu1 %v4926_v21  ;;  %v5004_v20 = vld [vmem:[%s7169_s2 + $0x70c] ss:$16 sps:$4 sm:$0xff]   ;;  %v4999_v21 = vld [vmem:[%s7169_s2 + $0x508] ss:$16 sps:$4 sm:$0xff]  }
  0xb5   :  { %1935 = vmatpush1.bf16.msra.mxu0 %v4921_v22  ;;  %1976 = vmatpush1.bf16.msra.mxu1 %v4924_v23  ;;  %v5002_v22 = vld [vmem:[%s7169_s2 + $0x708] ss:$16 sps:$4 sm:$0xff]   ;;  %v5007_v23 = vld [vmem:[%s7169_s2 + $0x52c] ss:$16 sps:$4 sm:$0xff]  }
  0xb6   :  { %1936 = vmatprep.subr.bf16.mxu0 %v4929_v25  ;;  %1977 = vmatprep.subr.bf16.mxu1 %v4932_v26  ;;  %v5010_v25 = vld [vmem:[%s7169_s2 + $0x72c] ss:$16 sps:$4 sm:$0xff]   ;;  %v5005_v26 = vld [vmem:[%s7169_s2 + $0x528] ss:$16 sps:$4 sm:$0xff]  }
  0xb9   :  { %1937 = vmatpush1.bf16.msra.mxu0 %v4927_v27  ;;  %1978 = vmatpush1.bf16.msra.mxu1 %v4930_v30  ;;  %v5008_v27 = vld [vmem:[%s7169_s2 + $0x728] ss:$16 sps:$4 sm:$0xff]   ;;  %v5013_v30 = vld [vmem:[%s7169_s2 + $0x54c] ss:$16 sps:$4 sm:$0xff]  }
  0xba   :  { %1938 = vmatprep.subr.bf16.mxu0 %v4935_v31  ;;  %1979 = vmatprep.subr.bf16.mxu1 %v4938_v32  ;;  %v5016_v31 = vld [vmem:[%s7169_s2 + $0x74c] ss:$16 sps:$4 sm:$0xff]   ;;  %v5011_v32 = vld [vmem:[%s7169_s2 + $0x548] ss:$16 sps:$4 sm:$0xff]  }
  0xbd   :  { %1939 = vmatpush1.bf16.msra.mxu0 %v4933_v33  ;;  %1980 = vmatpush1.bf16.msra.mxu1 %v4936_v35  ;;  %v5014_v33 = vld [vmem:[%s7169_s2 + $0x748] ss:$16 sps:$4 sm:$0xff]   ;;  %v5019_v35 = vld [vmem:[%s7169_s2 + $0x56c] ss:$16 sps:$4 sm:$0xff]  }
  0xbe   :  { %1940 = vmatprep.subr.bf16.mxu0 %v4941_v36  ;;  %1981 = vmatprep.subr.bf16.mxu1 %v4944_v37  ;;  %v5022_v36 = vld [vmem:[%s7169_s2 + $0x76c] ss:$16 sps:$4 sm:$0xff]   ;;  %v5017_v37 = vld [vmem:[%s7169_s2 + $0x568] ss:$16 sps:$4 sm:$0xff]  }
  0xc1   :  { %1941 = vmatpush1.bf16.msra.mxu0 %v4939_v38  ;;  %1982 = vmatpush1.bf16.msra.mxu1 %v4942_v40  ;;  %v5020_v38 = vld [vmem:[%s7169_s2 + $0x768] ss:$16 sps:$4 sm:$0xff]   ;;  %v5025_v40 = vld [vmem:[%s7169_s2 + $0x58c] ss:$16 sps:$4 sm:$0xff]  }
  0xc2   :  { %1942 = vmatprep.subr.bf16.mxu0 %v4947_v41  ;;  %1983 = vmatprep.subr.bf16.mxu1 %v4950_v42  ;;  %v5028_v41 = vld [vmem:[%s7169_s2 + $0x78c] ss:$16 sps:$4 sm:$0xff]   ;;  %v5023_v42 = vld [vmem:[%s7169_s2 + $0x588] ss:$16 sps:$4 sm:$0xff]  }
  0xc5   :  { %1943 = vmatpush1.bf16.msra.mxu0 %v4945_v43  ;;  %1984 = vmatpush1.bf16.msra.mxu1 %v4948_v44  ;;  %v5026_v43 = vld [vmem:[%s7169_s2 + $0x788] ss:$16 sps:$4 sm:$0xff]   ;;  %v5031_v44 = vld [vmem:[%s7169_s2 + $0x5ac] ss:$16 sps:$4 sm:$0xff]  }
  0xc6   :  { %1994 = vmatprep.subr.bf16.mxu0 %v4953_v45  ;;  %2035 = vmatprep.subr.bf16.mxu1 %v4956_v46  ;;  %v5034_v45 = vld [vmem:[%s7169_s2 + $0x7ac] ss:$16 sps:$4 sm:$0xff]   ;;  %v5029_v46 = vld [vmem:[%s7169_s2 + $0x5a8] ss:$16 sps:$4 sm:$0xff]  }
  0xc8   :  { %1945 = vmatmul.mubr.bf16.vlgmr.msra.gmra.mrb[12].mxu0 %v5711_v24  ;;  %1986 = vmatmul.mubr.bf16.vlgmr.msra.gmra.mrb[12].mxu1 %v5726_v29  ;;  %v4968_v24 = vld [vmem:[%s7169_s2 + $0x64c] ss:$16 sps:$4 sm:$0xff]   ;;  %v4963_v29 = vld [vmem:[%s7169_s2 + $0x448] ss:$16 sps:$4 sm:$0xff]  }
  0xc9   :  { %1995 = vmatpush1.bf16.msra.mxu0 %v4951_v47  ;;  %2036 = vmatpush1.bf16.msra.mxu1 %v4954_v48  ;;  %v5032_v47 = vld [vmem:[%s7169_s2 + $0x7a8] ss:$16 sps:$4 sm:$0xff]   ;;  %v5037_v48 = vld [vmem:[%s7169_s2 + $0x5cc] ss:$16 sps:$4 sm:$0xff]  }
  0xca   :  { %1996 = vmatprep.subr.bf16.mxu0 %v4959_v49  ;;  %2037 = vmatprep.subr.bf16.mxu1 %v4962_v50  ;;  %v5040_v49 = vld [vmem:[%s7169_s2 + $0x7cc] ss:$16 sps:$4 sm:$0xff]   ;;  %v5035_v50 = vld [vmem:[%s7169_s2 + $0x5c8] ss:$16 sps:$4 sm:$0xff]  }
  0xcb   :  { %2026 = vmatprep.mubr.bf16.mxu0 %v5722_v28  ;;  %2067 = vmatprep.mubr.bf16.mxu1 %v5742_v34  ;;  %v4974_v28 = vld [vmem:[%s7169_s2 + $0x66c] ss:$16 sps:$4 sm:$0xff]   ;;  %v4969_v34 = vld [vmem:[%s7169_s2 + $0x468] ss:$16 sps:$4 sm:$0xff]  }
  0xcd   :  { %1997 = vmatpush1.bf16.msra.mxu0 %v4957_v7  ;;  %2038 = vmatpush1.bf16.msra.mxu1 %v4960_v10  ;;  %v5038_v7 = vld [vmem:[%s7169_s2 + $0x7c8] ss:$16 sps:$4 sm:$0xff]   ;;  %v5043_v10 = vld [vmem:[%s7169_s2 + $0x5ec] ss:$16 sps:$4 sm:$0xff]  }
  0xce   :  { %1998 = vmatprep.subr.bf16.mxu0 %v4965_v51  ;;  %2039 = vmatprep.subr.bf16.mxu1 %v4968_v24  ;;  %v5046_v51 = vld [vmem:[%s7169_s2 + $0x7ec] ss:$16 sps:$4 sm:$0xff]   ;;  %v5041_v24 = vld [vmem:[%s7169_s2 + $0x5e8] ss:$16 sps:$4 sm:$0xff]  }
  0xd1   :  { %1999 = vmatpush1.bf16.msra.mxu0 %v4963_v29  ;;  %2040 = vmatpush1.bf16.msra.mxu1 %v4966_v53  ;;  %v5044_v29 = vld [vmem:[%s7169_s2 + $0x7e8] ss:$16 sps:$4 sm:$0xff]   ;;  %v5049_v53 = vld [vmem:[%s7171_s5 + $0x4] ss:$16 sps:$4 sm:$0xff]  }
  0xd2   :  { %2000 = vmatprep.subr.bf16.mxu0 %v4971_v54  ;;  %2041 = vmatprep.subr.bf16.mxu1 %v4974_v28  ;;  %v5052_v54 = vld [vmem:[%s7171_s5 + $0xc] ss:$16 sps:$4 sm:$0xff]   ;;  %v5047_v28 = vld [vmem:[%s7171_s5] ss:$16 sps:$4 sm:$0xff]  }
  0xd5   :  { %2001 = vmatpush1.bf16.msra.mxu0 %v4969_v34  ;;  %2042 = vmatpush1.bf16.msra.mxu1 %v4972_v55  ;;  %v5050_v34 = vld [vmem:[%s7171_s5 + $0x8] ss:$16 sps:$4 sm:$0xff]   ;;  %v5055_v55 = vld [vmem:[%s7171_s5 + $0x24] ss:$16 sps:$4 sm:$0xff]  }
  0xd6   :  { %2002 = vmatprep.subr.bf16.mxu0 %v4977_v56  ;;  %2043 = vmatprep.subr.bf16.mxu1 %v4980_v57  ;;  %v5058_v56 = vld [vmem:[%s7171_s5 + $0x2c] ss:$16 sps:$4 sm:$0xff]   ;;  %v5053_v57 = vld [vmem:[%s7171_s5 + $0x20] ss:$16 sps:$4 sm:$0xff]  }
  0xd9   :  { %2003 = vmatpush1.bf16.msra.mxu0 %v4975_v58  ;;  %2044 = vmatpush1.bf16.msra.mxu1 %v4978_v59  ;;  %v5056_v58 = vld [vmem:[%s7171_s5 + $0x28] ss:$16 sps:$4 sm:$0xff]   ;;  %v5061_v59 = vld [vmem:[%s7171_s5 + $0x44] ss:$16 sps:$4 sm:$0xff]  }
  0xda   :  { %2004 = vmatprep.subr.bf16.mxu0 %v4983_v60  ;;  %2045 = vmatprep.subr.bf16.mxu1 %v4986_v61  ;;  %v5062_v60 = vld [vmem:[%s7171_s5 + $0x48] ss:$16 sps:$4 sm:$0xff]   ;;  %v5067_v61 = vld [vmem:[%s7171_s5 + $0x64] ss:$16 sps:$4 sm:$0xff]  }
  0xdb   :  { %v6204_v2 = vpop.f32.mrb[0].mxu0  ;;  %v6206_v3 = vpop.f32.mrb[0].mxu1 }
  0xdc   :  { %v6211_v5 = vpop.f32.mrb[1].mxu0  ;;  %v6213_v6 = vpop.f32.mrb[1].mxu1 }
  0xdd   :  { %v366_v11 = vpop.f32.mrb[2].mxu0  ;;  %v407_v12 = vpop.f32.mrb[2].mxu1  ;;  %2005 = vmatpush1.bf16.msra.mxu0 %v4981_v62  ;;  %2046 = vmatpush1.bf16.msra.mxu1 %v4984_v63  ;;  %v5070_v62 = vld [vmem:[%s7171_s5 + $0x6c] ss:$16 sps:$4 sm:$0xff]   ;;  %v5065_v63 = vld [vmem:[%s7171_s5 + $0x60] ss:$16 sps:$4 sm:$0xff]  }
  0xde   :  { %v367_v14 = vpop.f32.mrb[3].mxu0  ;;  %v408_v15 = vpop.f32.mrb[3].mxu1  ;;  %2006 = vmatprep.subr.bf16.mxu0 %v4989_v0  ;;  %2047 = vmatprep.subr.bf16.mxu1 %v4992_v1  ;;  %v5068_v0 = vld [vmem:[%s7171_s5 + $0x68] ss:$16 sps:$4 sm:$0xff]   ;;  %v5073_v1 = vld [vmem:[%s7171_s5 + $0x84] ss:$16 sps:$4 sm:$0xff]  }
  0xdf   :  { %v5074_v11 = vld [vmem:[%s7171_s5 + $0x88] ss:$16 sps:$4 sm:$0xff]   ;;  %v5079_v12 = vld [vmem:[%s7171_s5 + $0xa4] ss:$16 sps:$4 sm:$0xff]   ;;  %v5077_v14 = vld [vmem:[%s7171_s5 + $0xa0] ss:$16 sps:$4 sm:$0xff]  }
  0xe0   :  { %v5080_v15 = vld [vmem:[%s7171_s5 + $0xa8] ss:$16 sps:$4 sm:$0xff]  }
  0xe1   :  { %2007 = vmatpush1.bf16.msra.mxu0 %v4987_v4  ;;  %2048 = vmatpush1.bf16.msra.mxu1 %v4990_v9  ;;  %v5076_v4 = vld [vmem:[%s7171_s5 + $0x8c] ss:$16 sps:$4 sm:$0xff]   ;;  %v5071_v9 = vld [vmem:[%s7171_s5 + $0x80] ss:$16 sps:$4 sm:$0xff]  }
  0xe2   :  { %2008 = vmatprep.subr.bf16.mxu0 %v4995_v13  ;;  %2049 = vmatprep.subr.bf16.mxu1 %v4998_v16  ;;  %v5082_v13 = vld [vmem:[%s7171_s5 + $0xac] ss:$16 sps:$4 sm:$0xff]   ;;  %v5085_v16 = vld [vmem:[%s7171_s5 + $0xc4] ss:$16 sps:$4 sm:$0xff]  }
  0xe5   :  { %2009 = vmatpush1.bf16.msra.mxu0 %v4993_v17  ;;  %2050 = vmatpush1.bf16.msra.mxu1 %v4996_v18  ;;  %v5088_v17 = vld [vmem:[%s7171_s5 + $0xcc] ss:$16 sps:$4 sm:$0xff]  }
  0xe6   :  { %2010 = vmatprep.subr.bf16.mxu0 %v5001_v19  ;;  %2051 = vmatprep.subr.bf16.mxu1 %v5004_v20 }
  0xe9   :  { %2011 = vmatpush1.bf16.msra.mxu0 %v4999_v21  ;;  %2052 = vmatpush1.bf16.msra.mxu1 %v5002_v22 }
  0xea   :  { %2012 = vmatprep.subr.bf16.mxu0 %v5007_v23  ;;  %2053 = vmatprep.subr.bf16.mxu1 %v5010_v25 }
  0xed   :  { %2013 = vmatpush1.bf16.msra.mxu0 %v5005_v26  ;;  %2054 = vmatpush1.bf16.msra.mxu1 %v5008_v27  ;;  %v5083_v27 = vld [vmem:[%s7171_s5 + $0xc0] ss:$16 sps:$4 sm:$0xff]  }
  0xee   :  { %2014 = vmatprep.subr.bf16.mxu0 %v5013_v30  ;;  %2055 = vmatprep.subr.bf16.mxu1 %v5016_v31  ;;  %v5086_v30 = vld [vmem:[%s7171_s5 + $0xc8] ss:$16 sps:$4 sm:$0xff]  }
  0xf1   :  { %2015 = vmatpush1.bf16.msra.mxu0 %v5011_v32  ;;  %2056 = vmatpush1.bf16.msra.mxu1 %v5014_v33  ;;  %v5094_v33 = vld [vmem:[%s7171_s5 + $0xec] ss:$16 sps:$4 sm:$0xff]  }
  0xf2   :  { %2016 = vmatprep.subr.bf16.mxu0 %v5019_v35  ;;  %2057 = vmatprep.subr.bf16.mxu1 %v5022_v36  ;;  %v5089_v36 = vld [vmem:[%s7171_s5 + $0xe0] ss:$16 sps:$4 sm:$0xff]  }
  0xf5   :  { %2017 = vmatpush1.bf16.msra.mxu0 %v5017_v37  ;;  %2058 = vmatpush1.bf16.msra.mxu1 %v5020_v38  ;;  %v5092_v37 = vld [vmem:[%s7171_s5 + $0xe8] ss:$16 sps:$4 sm:$0xff]   ;;  %v5097_v38 = vld [vmem:[%s7171_s5 + $0x104] ss:$16 sps:$4 sm:$0xff]  }
  0xf6   :  { %2018 = vmatprep.subr.bf16.mxu0 %v5025_v40  ;;  %2059 = vmatprep.subr.bf16.mxu1 %v5028_v41  ;;  %v5100_v40 = vld [vmem:[%s7171_s5 + $0x10c] ss:$16 sps:$4 sm:$0xff]   ;;  %v5095_v41 = vld [vmem:[%s7171_s5 + $0x100] ss:$16 sps:$4 sm:$0xff]  }
  0xf9   :  { %2019 = vmatpush1.bf16.msra.mxu0 %v5023_v42  ;;  %2060 = vmatpush1.bf16.msra.mxu1 %v5026_v43  ;;  %v5098_v42 = vld [vmem:[%s7171_s5 + $0x108] ss:$16 sps:$4 sm:$0xff]   ;;  %v5103_v43 = vld [vmem:[%s7171_s5 + $0x124] ss:$16 sps:$4 sm:$0xff]  }
  0xfa   :  { %2020 = vmatprep.subr.bf16.mxu0 %v5031_v44  ;;  %2061 = vmatprep.subr.bf16.mxu1 %v5034_v45  ;;  %v5106_v44 = vld [vmem:[%s7171_s5 + $0x12c] ss:$16 sps:$4 sm:$0xff]   ;;  %v5101_v45 = vld [vmem:[%s7171_s5 + $0x120] ss:$16 sps:$4 sm:$0xff]  }
  0xfd   :  { %2021 = vmatpush1.bf16.msra.mxu0 %v5029_v46  ;;  %2062 = vmatpush1.bf16.msra.mxu1 %v5032_v47  ;;  %v5104_v46 = vld [vmem:[%s7171_s5 + $0x128] ss:$16 sps:$4 sm:$0xff]   ;;  %v5109_v47 = vld [vmem:[%s7171_s5 + $0x144] ss:$16 sps:$4 sm:$0xff]  }
  0xfe   :  { %2022 = vmatprep.subr.bf16.mxu0 %v5037_v48  ;;  %2063 = vmatprep.subr.bf16.mxu1 %v5040_v49  ;;  %v5112_v48 = vld [vmem:[%s7171_s5 + $0x14c] ss:$16 sps:$4 sm:$0xff]   ;;  %v5107_v49 = vld [vmem:[%s7171_s5 + $0x140] ss:$16 sps:$4 sm:$0xff]  }
 0x101   :  { %2023 = vmatpush1.bf16.msra.mxu0 %v5035_v50  ;;  %2064 = vmatpush1.bf16.msra.mxu1 %v5038_v7  ;;  %v5110_v50 = vld [vmem:[%s7171_s5 + $0x148] ss:$16 sps:$4 sm:$0xff]   ;;  %v5115_v7 = vld [vmem:[%s7171_s5 + $0x164] ss:$16 sps:$4 sm:$0xff]  }
 0x102   :  { %2024 = vmatprep.subr.bf16.mxu0 %v5043_v10  ;;  %2065 = vmatprep.subr.bf16.mxu1 %v5046_v51  ;;  %v5118_v10 = vld [vmem:[%s7171_s5 + $0x16c] ss:$16 sps:$4 sm:$0xff]   ;;  %v5113_v51 = vld [vmem:[%s7171_s5 + $0x160] ss:$16 sps:$4 sm:$0xff]  }
 0x105   :  { %2025 = vmatpush1.bf16.msra.mxu0 %v5041_v24  ;;  %2066 = vmatpush1.bf16.msra.mxu1 %v5044_v29  ;;  %v5116_v24 = vld [vmem:[%s7171_s5 + $0x168] ss:$16 sps:$4 sm:$0xff]   ;;  %v5121_v29 = vld [vmem:[%s7171_s5 + $0x184] ss:$16 sps:$4 sm:$0xff]  }
 0x106   :  { %2908 = vmatprep.subr.bf16.mxu0 %v5049_v53  ;;  %2990 = vmatprep.subr.bf16.mxu1 %v5052_v54  ;;  %v5124_v53 = vld [vmem:[%s7171_s5 + $0x18c] ss:$16 sps:$4 sm:$0xff]   ;;  %v5119_v54 = vld [vmem:[%s7171_s5 + $0x180] ss:$16 sps:$4 sm:$0xff]  }
 0x108   :  { %2027 = vmatmul.mubr.bf16.vlgmr.msra.gmra.mrb[16].mxu0 %v5664_v8  ;;  %2068 = vmatmul.mubr.bf16.vlgmr.msra.gmra.mrb[16].mxu1 %v5930_v39  ;;  %v5064_v8 = vld [vmem:[%s7171_s5 + $0x4c] ss:$16 sps:$4 sm:$0xff]   ;;  %v5059_v39 = vld [vmem:[%s7171_s5 + $0x40] ss:$16 sps:$4 sm:$0xff]  }
 0x109   :  { %2909 = vmatpush1.bf16.msra.mxu0 %v5047_v28  ;;  %2991 = vmatpush1.bf16.msra.mxu1 %v5050_v34  ;;  %v5122_v28 = vld [vmem:[%s7171_s5 + $0x188] ss:$16 sps:$4 sm:$0xff]   ;;  %v5127_v34 = vld [vmem:[%s7171_s5 + $0x1a4] ss:$16 sps:$4 sm:$0xff]  }
 0x10a   :  { %2910 = vmatprep.subr.bf16.mxu0 %v5055_v55  ;;  %2992 = vmatprep.subr.bf16.mxu1 %v5058_v56  ;;  %v5130_v55 = vld [vmem:[%s7171_s5 + $0x1ac] ss:$16 sps:$4 sm:$0xff]   ;;  %v5125_v56 = vld [vmem:[%s7171_s5 + $0x1a0] ss:$16 sps:$4 sm:$0xff]  }
 0x10d   :  { %2911 = vmatpush1.bf16.msra.mxu0 %v5053_v57  ;;  %2993 = vmatpush1.bf16.msra.mxu1 %v5056_v58  ;;  %v5128_v57 = vld [vmem:[%s7171_s5 + $0x1a8] ss:$16 sps:$4 sm:$0xff]   ;;  %v5133_v58 = vld [vmem:[%s7171_s5 + $0x1c4] ss:$16 sps:$4 sm:$0xff]  }
 0x10e   :  { %2912 = vmatprep.subr.bf16.mxu0 %v5061_v59  ;;  %2994 = vmatprep.subr.bf16.mxu1 %v5064_v8  ;;  %v5136_v59 = vld [vmem:[%s7171_s5 + $0x1cc] ss:$16 sps:$4 sm:$0xff]   ;;  %v5131_v8 = vld [vmem:[%s7171_s5 + $0x1c0] ss:$16 sps:$4 sm:$0xff]  }
 0x111   :  { %2913 = vmatpush1.bf16.msra.mxu0 %v5059_v39  ;;  %2995 = vmatpush1.bf16.msra.mxu1 %v5062_v60  ;;  %v5134_v39 = vld [vmem:[%s7171_s5 + $0x1c8] ss:$16 sps:$4 sm:$0xff]   ;;  %v5139_v60 = vld [vmem:[%s7171_s5 + $0x1e4] ss:$16 sps:$4 sm:$0xff]  }
 0x112   :  { %2914 = vmatprep.subr.bf16.mxu0 %v5067_v61  ;;  %2996 = vmatprep.subr.bf16.mxu1 %v5070_v62  ;;  %v5142_v61 = vld [vmem:[%s7171_s5 + $0x1ec] ss:$16 sps:$4 sm:$0xff]   ;;  %v5137_v62 = vld [vmem:[%s7171_s5 + $0x1e0] ss:$16 sps:$4 sm:$0xff]  }
 0x115   :  { %2915 = vmatpush1.bf16.msra.mxu0 %v5065_v63  ;;  %2997 = vmatpush1.bf16.msra.mxu1 %v5068_v0  ;;  %v5140_v63 = vld [vmem:[%s7171_s5 + $0x1e8] ss:$16 sps:$4 sm:$0xff]   ;;  %v5145_v0 = vld [vmem:[%s7171_s5 + $0x204] ss:$16 sps:$4 sm:$0xff]  }
 0x116   :  { %2916 = vmatprep.subr.bf16.mxu0 %v5073_v1  ;;  %2998 = vmatprep.subr.bf16.mxu1 %v5076_v4  ;;  %v5148_v1 = vld [vmem:[%s7171_s5 + $0x20c] ss:$16 sps:$4 sm:$0xff]   ;;  %v6533_v4 = vsub.s32 0, %v5620_v52 }
 0x119   :  { %2917 = vmatpush1.bf16.msra.mxu0 %v5071_v9  ;;  %2999 = vmatpush1.bf16.msra.mxu1 %v5074_v11  ;;  %v6538_v9 = vld [vmem:[%s7172_s4] sm:$0xf]  ;;  %v6541_v11 = vsub.s32 1, %v5620_v52 }
 0x11a   :  { %2918 = vmatprep.subr.bf16.mxu0 %v5079_v12  ;;  %3000 = vmatprep.subr.bf16.mxu1 %v5082_v13 }
 0x11b   :  { %v1782_v18 = vpop.f32.mrb[4].mxu0  ;;  %v1823_v19 = vpop.f32.mrb[4].mxu1 }
 0x11c   :  { %v1783_v20 = vadd.f32 %v1782_v18, %v6204_v2  ;;  %v1784_v21 = vpop.f32.mrb[5].mxu0  ;;  %v1825_v22 = vpop.f32.mrb[5].mxu1 }
 0x11d   :  { %v1785_v23 = vadd.f32 %v1784_v21, %v6211_v5  ;;  %v1786_v25 = vpop.f32.mrb[6].mxu0  ;;  %v1827_v26 = vpop.f32.mrb[6].mxu1  ;;  %2919 = vmatpush1.bf16.msra.mxu0 %v5077_v14  ;;  %3001 = vmatpush1.bf16.msra.mxu1 %v5080_v15  ;;  %v5091_v5 = vld [vmem:[%s7171_s5 + $0xe4] ss:$16 sps:$4 sm:$0xff]   ;;  %v2081_v15 = vrot.slane %v6538_v9, %v6533_v4 }
 0x11e   :  { %v6414_v31 = vadd.f32 %v1823_v19, %v1783_v20  ;;  %v1787_v32 = vpop.f32.mrb[7].mxu0  ;;  %v1828_v2 = vpop.f32.mrb[7].mxu1  ;;  %2920 = vmatprep.subr.bf16.mxu0 %v5085_v16  ;;  %3002 = vmatprep.subr.bf16.mxu1 %v5088_v17  ;;  %v2085_v19 = vrot.slane %v6538_v9, %v6541_v11 }
 0x11f   :  { %v6422_v35 = vadd.f32 %v1825_v22, %v1785_v23 }
 0x121   :  { %2921 = vmatpush1.bf16.msra.mxu0 %v5083_v27  ;;  %3003 = vmatpush1.bf16.msra.mxu1 %v5086_v30 }
 0x122   :  { %2922 = vmatprep.subr.bf16.mxu0 %v5091_v5  ;;  %3004 = vmatprep.subr.bf16.mxu1 %v5094_v33 }
 0x125   :  { %2923 = vmatpush1.bf16.msra.mxu0 %v5089_v36  ;;  %3005 = vmatpush1.bf16.msra.mxu1 %v5092_v37  ;;  %v5146_v36 = vld [vmem:[%s7171_s5 + $0x208] ss:$16 sps:$4 sm:$0xff]  }
 0x126   :  { %2924 = vmatprep.subr.bf16.mxu0 %v5097_v38  ;;  %3006 = vmatprep.subr.bf16.mxu1 %v5100_v40  ;;  %v5151_v38 = vld [vmem:[%s7171_s5 + $0x224] ss:$16 sps:$4 sm:$0xff]   ;;  %v5154_v40 = vld [vmem:[%s7171_s5 + $0x22c] ss:$16 sps:$4 sm:$0xff]  }
 0x129   :  { %2925 = vmatpush1.bf16.msra.mxu0 %v5095_v41  ;;  %3007 = vmatpush1.bf16.msra.mxu1 %v5098_v42  ;;  %v5149_v41 = vld [vmem:[%s7171_s5 + $0x220] ss:$16 sps:$4 sm:$0xff]   ;;  %v5152_v42 = vld [vmem:[%s7171_s5 + $0x228] ss:$16 sps:$4 sm:$0xff]  }
 0x12a   :  { %2926 = vmatprep.subr.bf16.mxu0 %v5103_v43  ;;  %3008 = vmatprep.subr.bf16.mxu1 %v5106_v44  ;;  %v5157_v43 = vld [vmem:[%s7171_s5 + $0x244] ss:$16 sps:$4 sm:$0xff]   ;;  %v5160_v44 = vld [vmem:[%s7171_s5 + $0x24c] ss:$16 sps:$4 sm:$0xff]  }
 0x12d   :  { %2927 = vmatpush1.bf16.msra.mxu0 %v5101_v45  ;;  %3009 = vmatpush1.bf16.msra.mxu1 %v5104_v46  ;;  %v5155_v45 = vld [vmem:[%s7171_s5 + $0x240] ss:$16 sps:$4 sm:$0xff]   ;;  %v5158_v46 = vld [vmem:[%s7171_s5 + $0x248] ss:$16 sps:$4 sm:$0xff]  }
 0x12e   :  { %2928 = vmatprep.subr.bf16.mxu0 %v5109_v47  ;;  %3010 = vmatprep.subr.bf16.mxu1 %v5112_v48  ;;  %v5163_v47 = vld [vmem:[%s7171_s5 + $0x264] ss:$16 sps:$4 sm:$0xff]   ;;  %v5166_v48 = vld [vmem:[%s7171_s5 + $0x26c] ss:$16 sps:$4 sm:$0xff]  }
 0x131   :  { %2929 = vmatpush1.bf16.msra.mxu0 %v5107_v49  ;;  %3011 = vmatpush1.bf16.msra.mxu1 %v5110_v50  ;;  %v5161_v49 = vld [vmem:[%s7171_s5 + $0x260] ss:$16 sps:$4 sm:$0xff]   ;;  %v5164_v50 = vld [vmem:[%s7171_s5 + $0x268] ss:$16 sps:$4 sm:$0xff]  }
 0x132   :  { %2930 = vmatprep.subr.bf16.mxu0 %v5115_v7  ;;  %3012 = vmatprep.subr.bf16.mxu1 %v5118_v10  ;;  %v5169_v7 = vld [vmem:[%s7171_s5 + $0x284] ss:$16 sps:$4 sm:$0xff]   ;;  %v5172_v10 = vld [vmem:[%s7171_s5 + $0x28c] ss:$16 sps:$4 sm:$0xff]  }
 0x135   :  { %2931 = vmatpush1.bf16.msra.mxu0 %v5113_v51  ;;  %3013 = vmatpush1.bf16.msra.mxu1 %v5116_v24  ;;  %v5167_v51 = vld [vmem:[%s7171_s5 + $0x280] ss:$16 sps:$4 sm:$0xff]   ;;  %v5170_v24 = vld [vmem:[%s7171_s5 + $0x288] ss:$16 sps:$4 sm:$0xff]  }
 0x136   :  { %2932 = vmatprep.subr.bf16.mxu0 %v5121_v29  ;;  %3014 = vmatprep.subr.bf16.mxu1 %v5124_v53  ;;  %v5175_v29 = vld [vmem:[%s7171_s5 + $0x2a4] ss:$16 sps:$4 sm:$0xff]   ;;  %v5178_v53 = vld [vmem:[%s7171_s5 + $0x2ac] ss:$16 sps:$4 sm:$0xff]  }
 0x139   :  { %2933 = vmatpush1.bf16.msra.mxu0 %v5119_v54  ;;  %3015 = vmatpush1.bf16.msra.mxu1 %v5122_v28  ;;  %v5173_v54 = vld [vmem:[%s7171_s5 + $0x2a0] ss:$16 sps:$4 sm:$0xff]   ;;  %v5176_v28 = vld [vmem:[%s7171_s5 + $0x2a8] ss:$16 sps:$4 sm:$0xff]  }
 0x13a   :  { %2934 = vmatprep.subr.bf16.mxu0 %v5127_v34  ;;  %3016 = vmatprep.subr.bf16.mxu1 %v5130_v55  ;;  %v5181_v34 = vld [vmem:[%s7171_s5 + $0x2c4] ss:$16 sps:$4 sm:$0xff]   ;;  %v5184_v55 = vld [vmem:[%s7171_s5 + $0x2cc] ss:$16 sps:$4 sm:$0xff]  }
 0x13d   :  { %2935 = vmatpush1.bf16.msra.mxu0 %v5125_v56  ;;  %3017 = vmatpush1.bf16.msra.mxu1 %v5128_v57  ;;  %v5179_v56 = vld [vmem:[%s7171_s5 + $0x2c0] ss:$16 sps:$4 sm:$0xff]   ;;  %v5182_v57 = vld [vmem:[%s7171_s5 + $0x2c8] ss:$16 sps:$4 sm:$0xff]  }
 0x13e   :  { %2936 = vmatprep.subr.bf16.mxu0 %v5133_v58  ;;  %3018 = vmatprep.subr.bf16.mxu1 %v5136_v59  ;;  %v5187_v58 = vld [vmem:[%s7171_s5 + $0x2e4] ss:$16 sps:$4 sm:$0xff]   ;;  %v5190_v59 = vld [vmem:[%s7171_s5 + $0x2ec] ss:$16 sps:$4 sm:$0xff]  }
 0x141   :  { %2937 = vmatpush1.bf16.msra.mxu0 %v5131_v8  ;;  %3019 = vmatpush1.bf16.msra.mxu1 %v5134_v39  ;;  %v5185_v8 = vld [vmem:[%s7171_s5 + $0x2e0] ss:$16 sps:$4 sm:$0xff]   ;;  %v5188_v39 = vld [vmem:[%s7171_s5 + $0x2e8] ss:$16 sps:$4 sm:$0xff]  }
 0x142   :  { %2938 = vmatprep.subr.bf16.mxu0 %v5139_v60  ;;  %3020 = vmatprep.subr.bf16.mxu1 %v5142_v61  ;;  %v5193_v60 = vld [vmem:[%s7171_s5 + $0x304] ss:$16 sps:$4 sm:$0xff]   ;;  %v5196_v61 = vld [vmem:[%s7171_s5 + $0x30c] ss:$16 sps:$4 sm:$0xff]  }
 0x145   :  { %2939 = vmatpush1.bf16.msra.mxu0 %v5137_v62  ;;  %3021 = vmatpush1.bf16.msra.mxu1 %v5140_v63  ;;  %v5191_v62 = vld [vmem:[%s7171_s5 + $0x300] ss:$16 sps:$4 sm:$0xff]   ;;  %v5194_v63 = vld [vmem:[%s7171_s5 + $0x308] ss:$16 sps:$4 sm:$0xff]  }
 0x146   :  { %2949 = vmatprep.subr.bf16.mxu0 %v5145_v0  ;;  %3031 = vmatprep.subr.bf16.mxu1 %v5148_v1  ;;  %v5199_v0 = vld [vmem:[%s7171_s5 + $0x324] ss:$16 sps:$4 sm:$0xff]   ;;  %v5202_v1 = vld [vmem:[%s7171_s5 + $0x32c] ss:$16 sps:$4 sm:$0xff]  }
 0x15b   :  { %v1864_v12 = vpop.f32.mrb[8].mxu0  ;;  %v1905_v13 = vpop.f32.mrb[8].mxu1 }
 0x15c   :  { %v1865_v14 = vadd.f32 %v1864_v12, %v6414_v31  ;;  %v1866_v16 = vpop.f32.mrb[9].mxu0  ;;  %v1907_v17 = vpop.f32.mrb[9].mxu1  ;;  %v5197_v12 = vld [vmem:[%s7171_s5 + $0x320] ss:$16 sps:$4 sm:$0xff]  }
 0x15d   :  { %v1867_v18 = vadd.f32 %v1866_v16, %v6422_v35  ;;  %v1868_v20 = vpop.f32.mrb[10].mxu0  ;;  %v1909_v21 = vpop.f32.mrb[10].mxu1  ;;  %v5143_v35 = vld [vmem:[%s7171_s5 + $0x200] ss:$16 sps:$4 sm:$0xff]  }
 0x15e   :  { %v1906_v22 = vadd.f32 %v1905_v13, %v1865_v14  ;;  %v1869_v23 = vpop.f32.mrb[11].mxu0  ;;  %v1910_v25 = vpop.f32.mrb[11].mxu1  ;;  %v5200_v13 = vld [vmem:[%s7171_s5 + $0x328] ss:$16 sps:$4 sm:$0xff]   ;;  %v5205_v14 = vld [vmem:[%s7171_s5 + $0x344] ss:$16 sps:$4 sm:$0xff]  }
 0x15f   :  { %v1908_v26 = vadd.f32 %v1907_v17, %v1867_v18  ;;  %v5203_v16 = vld [vmem:[%s7171_s5 + $0x340] ss:$16 sps:$4 sm:$0xff]   ;;  %v5206_v17 = vld [vmem:[%s7171_s5 + $0x348] ss:$16 sps:$4 sm:$0xff]   ;;  %v5211_v18 = vld [vmem:[%s7171_s5 + $0x364] ss:$16 sps:$4 sm:$0xff]  }
 0x160   :  { %v2098_v27 = vadd.f32 %v2081_v15, %v1906_v22  ;;  %v5208_v15 = vld [vmem:[%s7171_s5 + $0x34c] ss:$16 sps:$4 sm:$0xff]   ;;  %v5209_v20 = vld [vmem:[%s7171_s5 + $0x360] ss:$16 sps:$4 sm:$0xff]   ;;  %v5212_v21 = vld [vmem:[%s7171_s5 + $0x368] ss:$16 sps:$4 sm:$0xff]  }
 0x161   :  { %v2099_v30 = vadd.f32 %v2085_v19, %v1908_v26  ;;  %v5214_v19 = vld [vmem:[%s7171_s5 + $0x36c] ss:$16 sps:$4 sm:$0xff]   ;;  %v5217_v22 = vld [vmem:[%s7171_s5 + $0x384] ss:$16 sps:$4 sm:$0xff]   ;;  %v5215_v25 = vld [vmem:[%s7171_s5 + $0x380] ss:$16 sps:$4 sm:$0xff]  }
 0x162   :  { %vm2102_vm2 = vcmp.gt.f32.partialorder %v2098_v27, 0.0  ;;  %v2106_v31 = vmul.f32 0.2, %v2098_v27  ;;  %v5220_v23 = vld [vmem:[%s7171_s5 + $0x38c] ss:$16 sps:$4 sm:$0xff]  }
 0x163   :  { %v2107_v32 = vmul.f32 0.2, %v2099_v30  ;;  %vm2103_vm3 = vcmp.gt.f32.partialorder %v2099_v30, 0.0  ;;  %v5218_v26 = vld [vmem:[%s7171_s5 + $0x388] ss:$16 sps:$4 sm:$0xff]  }
 0x164   :  { %v2110_v2 = vsel %vm2102_vm2, %v2098_v27, %v2106_v31  ;;  %v5223_v27 = vld [vmem:[%s7171_s5 + $0x3a4] ss:$16 sps:$4 sm:$0xff]   ;;  %v5221_v31 = vld [vmem:[%s7171_s5 + $0x3a0] ss:$16 sps:$4 sm:$0xff]  }
 0x165   :  { %v2111_v5 = vsel %vm2103_vm3, %v2099_v30, %v2107_v32  ;;  %v2114_v37 = vpack.c.bf16 %v2110_v2, %v2110_v2  ;;  %v5226_v30 = vld [vmem:[%s7171_s5 + $0x3ac] ss:$16 sps:$4 sm:$0xff]   ;;  %v5224_v32 = vld [vmem:[%s7171_s5 + $0x3a8] ss:$16 sps:$4 sm:$0xff]  }
 0x166   :  { %v2115_v33 = vpack.c.bf16 %v2111_v5, %v2111_v5 }
 0x168   :  { %2940 = vmatprep.mubr.bf16.mxu0 %v2115_v33  ;;  %3022 = vmatprep.mubr.bf16.mxu1 %v2115_v33  ;;  %v5229_v33 = vld [vmem:[%s7171_s5 + $0x3c4] ss:$16 sps:$4 sm:$0xff]  }
 0x169   :  { %2941 = vmatmul.mubr.bf16.vlgmr.msra.gmra.mrb[20].mxu0 %v2114_v37  ;;  %3023 = vmatmul.mubr.bf16.vlgmr.msra.gmra.mrb[20].mxu1 %v2114_v37 }
 0x16a   :  { %2950 = vmatpush1.bf16.msra.mxu0 %v5143_v35  ;;  %3032 = vmatpush1.bf16.msra.mxu1 %v5146_v36  ;;  %v5232_v35 = vld [vmem:[%s7171_s5 + $0x3cc] ss:$16 sps:$4 sm:$0xff]  }
 0x16b   :  { %2951 = vmatprep.subr.bf16.mxu0 %v5151_v38  ;;  %3033 = vmatprep.subr.bf16.mxu1 %v5154_v40  ;;  %v5227_v40 = vld [vmem:[%s7171_s5 + $0x3c0] ss:$16 sps:$4 sm:$0xff]  }
 0x16e   :  { %2952 = vmatpush1.bf16.msra.mxu0 %v5149_v41  ;;  %3034 = vmatpush1.bf16.msra.mxu1 %v5152_v42  ;;  %v5230_v41 = vld [vmem:[%s7171_s5 + $0x3c8] ss:$16 sps:$4 sm:$0xff]  }
 0x16f   :  { %2953 = vmatprep.subr.bf16.mxu0 %v5157_v43  ;;  %3035 = vmatprep.subr.bf16.mxu1 %v5160_v44 }
 0x172   :  { %2954 = vmatpush1.bf16.msra.mxu0 %v5155_v45  ;;  %3036 = vmatpush1.bf16.msra.mxu1 %v5158_v46  ;;  %v5235_v45 = vld [vmem:[%s7171_s5 + $0x3e4] ss:$16 sps:$4 sm:$0xff]  }
 0x173   :  { %2955 = vmatprep.subr.bf16.mxu0 %v5163_v47  ;;  %3037 = vmatprep.subr.bf16.mxu1 %v5166_v48 }
 0x176   :  { %2956 = vmatpush1.bf16.msra.mxu0 %v5161_v49  ;;  %3038 = vmatpush1.bf16.msra.mxu1 %v5164_v50  ;;  %v5238_v49 = vld [vmem:[%s7171_s5 + $0x3ec] ss:$16 sps:$4 sm:$0xff]   ;;  %v5236_v50 = vld [vmem:[%s7171_s5 + $0x3e8] ss:$16 sps:$4 sm:$0xff]  }
 0x177   :  { %2957 = vmatprep.subr.bf16.mxu0 %v5169_v7  ;;  %3039 = vmatprep.subr.bf16.mxu1 %v5172_v10  ;;  %v5241_v7 = vld [vmem:[%s7173_s7 + $0x4] ss:$16 sps:$4 sm:$0xff]   ;;  %v5244_v10 = vld [vmem:[%s7173_s7 + $0xc] ss:$16 sps:$4 sm:$0xff]  }
 0x17a   :  { %2958 = vmatpush1.bf16.msra.mxu0 %v5167_v51  ;;  %3040 = vmatpush1.bf16.msra.mxu1 %v5170_v24  ;;  %v6744_v51 = vsub.s32 2, %v5620_v52  ;;  %v6747_v24 = vsub.s32 3, %v5620_v52 }
 0x17b   :  { %2959 = vmatprep.subr.bf16.mxu0 %v5175_v29  ;;  %3041 = vmatprep.subr.bf16.mxu1 %v5178_v53 }
 0x17e   :  { %2960 = vmatpush1.bf16.msra.mxu0 %v5173_v54  ;;  %3042 = vmatpush1.bf16.msra.mxu1 %v5176_v28  ;;  %v2089_v28 = vrot.slane %v6538_v9, %v6744_v51 }
 0x17f   :  { %2961 = vmatprep.subr.bf16.mxu0 %v5181_v34  ;;  %3043 = vmatprep.subr.bf16.mxu1 %v5184_v55 }
 0x182   :  { %2962 = vmatpush1.bf16.msra.mxu0 %v5179_v56  ;;  %3044 = vmatpush1.bf16.msra.mxu1 %v5182_v57  ;;  %v2093_v57 = vrot.slane %v6538_v9, %v6747_v24  ;;  %v5242_v9 = vld [vmem:[%s7173_s7 + $0x8] ss:$16 sps:$4 sm:$0xff]  }
 0x183   :  { %2963 = vmatprep.subr.bf16.mxu0 %v5187_v58  ;;  %3045 = vmatprep.subr.bf16.mxu1 %v5190_v59 }
 0x186   :  { %2964 = vmatpush1.bf16.msra.mxu0 %v5185_v8  ;;  %3046 = vmatpush1.bf16.msra.mxu1 %v5188_v39 }
 0x187   :  { %2965 = vmatprep.subr.bf16.mxu0 %v5193_v60  ;;  %3047 = vmatprep.subr.bf16.mxu1 %v5196_v61 }
 0x18a   :  { %2966 = vmatpush1.bf16.msra.mxu0 %v5191_v62  ;;  %3048 = vmatpush1.bf16.msra.mxu1 %v5194_v63 }
 0x18b   :  { %2967 = vmatprep.subr.bf16.mxu0 %v5199_v0  ;;  %3049 = vmatprep.subr.bf16.mxu1 %v5202_v1 }
 0x18e   :  { %2968 = vmatpush1.bf16.msra.mxu0 %v5197_v12  ;;  %3050 = vmatpush1.bf16.msra.mxu1 %v5200_v13 }
 0x18f   :  { %2969 = vmatprep.subr.bf16.mxu0 %v5205_v14  ;;  %3051 = vmatprep.subr.bf16.mxu1 %v5208_v15  ;;  %v5239_v14 = vld [vmem:[%s7173_s7] ss:$16 sps:$4 sm:$0xff]  }
 0x192   :  { %2970 = vmatpush1.bf16.msra.mxu0 %v5203_v16  ;;  %3052 = vmatpush1.bf16.msra.mxu1 %v5206_v17  ;;  %v5247_v16 = vld [vmem:[%s7173_s7 + $0x24] ss:$16 sps:$4 sm:$0xff]   ;;  %v5250_v17 = vld [vmem:[%s7173_s7 + $0x2c] ss:$16 sps:$4 sm:$0xff]  }
 0x193   :  { %2971 = vmatprep.subr.bf16.mxu0 %v5211_v18  ;;  %3053 = vmatprep.subr.bf16.mxu1 %v5214_v19  ;;  %v5245_v18 = vld [vmem:[%s7173_s7 + $0x20] ss:$16 sps:$4 sm:$0xff]   ;;  %v5248_v19 = vld [vmem:[%s7173_s7 + $0x28] ss:$16 sps:$4 sm:$0xff]  }
 0x196   :  { %2972 = vmatpush1.bf16.msra.mxu0 %v5209_v20  ;;  %3054 = vmatpush1.bf16.msra.mxu1 %v5212_v21  ;;  %v5253_v20 = vld [vmem:[%s7173_s7 + $0x44] ss:$16 sps:$4 sm:$0xff]   ;;  %v5256_v21 = vld [vmem:[%s7173_s7 + $0x4c] ss:$16 sps:$4 sm:$0xff]  }
 0x197   :  { %2973 = vmatprep.subr.bf16.mxu0 %v5217_v22  ;;  %3055 = vmatprep.subr.bf16.mxu1 %v5220_v23  ;;  %v5251_v22 = vld [vmem:[%s7173_s7 + $0x40] ss:$16 sps:$4 sm:$0xff]   ;;  %v5254_v23 = vld [vmem:[%s7173_s7 + $0x48] ss:$16 sps:$4 sm:$0xff]  }
 0x19a   :  { %2974 = vmatpush1.bf16.msra.mxu0 %v5215_v25  ;;  %3056 = vmatpush1.bf16.msra.mxu1 %v5218_v26  ;;  %v5259_v25 = vld [vmem:[%s7173_s7 + $0x64] ss:$16 sps:$4 sm:$0xff]   ;;  %v5262_v26 = vld [vmem:[%s7173_s7 + $0x6c] ss:$16 sps:$4 sm:$0xff]  }
 0x19b   :  { %v1946_v2 = vpop.f32.mrb[12].mxu0  ;;  %v1987_v5 = vpop.f32.mrb[12].mxu1  ;;  %2975 = vmatprep.subr.bf16.mxu0 %v5223_v27  ;;  %3057 = vmatprep.subr.bf16.mxu1 %v5226_v30  ;;  %v5257_v27 = vld [vmem:[%s7173_s7 + $0x60] ss:$16 sps:$4 sm:$0xff]   ;;  %v5260_v30 = vld [vmem:[%s7173_s7 + $0x68] ss:$16 sps:$4 sm:$0xff]  }
 0x19c   :  { %v1947_v36 = vadd.f32 %v1946_v2, %v6206_v3  ;;  %v1948_v37 = vpop.f32.mrb[13].mxu0  ;;  %v1989_v38 = vpop.f32.mrb[13].mxu1  ;;  %v5263_v2 = vld [vmem:[%s7173_s7 + $0x80] ss:$16 sps:$4 sm:$0xff]  }
 0x19d   :  { %v1949_v42 = vadd.f32 %v1948_v37, %v6213_v6  ;;  %v1950_v43 = vpop.f32.mrb[14].mxu0  ;;  %v1991_v44 = vpop.f32.mrb[14].mxu1  ;;  %v5233_v6 = vld [vmem:[%s7171_s5 + $0x3e0] ss:$16 sps:$4 sm:$0xff]   ;;  %v5272_v37 = vld [vmem:[%s7173_s7 + $0xa8] ss:$16 sps:$4 sm:$0xff]  }
 0x19e   :  { %v1988_v46 = vadd.f32 %v1987_v5, %v1947_v36  ;;  %v1951_v3 = vpop.f32.mrb[15].mxu0  ;;  %v1992_v47 = vpop.f32.mrb[15].mxu1  ;;  %2976 = vmatpush1.bf16.msra.mxu0 %v5221_v31  ;;  %3058 = vmatpush1.bf16.msra.mxu1 %v5224_v32  ;;  %v5265_v31 = vld [vmem:[%s7173_s7 + $0x84] ss:$16 sps:$4 sm:$0xff]   ;;  %v5268_v32 = vld [vmem:[%s7173_s7 + $0x8c] ss:$16 sps:$4 sm:$0xff]  }
 0x19f   :  { %v1990_v48 = vadd.f32 %v1989_v38, %v1949_v42  ;;  %2977 = vmatprep.subr.bf16.mxu0 %v5229_v33  ;;  %3059 = vmatprep.subr.bf16.mxu1 %v5232_v35  ;;  %v5266_v5 = vld [vmem:[%s7173_s7 + $0x88] ss:$16 sps:$4 sm:$0xff]   ;;  %v5271_v33 = vld [vmem:[%s7173_s7 + $0xa4] ss:$16 sps:$4 sm:$0xff]   ;;  %v5274_v35 = vld [vmem:[%s7173_s7 + $0xac] ss:$16 sps:$4 sm:$0xff]  }
 0x1a0   :  { %v5269_v36 = vld [vmem:[%s7173_s7 + $0xa0] ss:$16 sps:$4 sm:$0xff]   ;;  %v5277_v38 = vld [vmem:[%s7173_s7 + $0xc4] ss:$16 sps:$4 sm:$0xff]   ;;  %v5278_v42 = vld [vmem:[%s7173_s7 + $0xc8] ss:$16 sps:$4 sm:$0xff]  }
 0x1a1   :  { %v5283_v43 = vld [vmem:[%s7173_s7 + $0xe4] ss:$16 sps:$4 sm:$0xff]   ;;  %v5286_v44 = vld [vmem:[%s7173_s7 + $0xec] ss:$16 sps:$4 sm:$0xff]  }
 0x1a2   :  { %2978 = vmatpush1.bf16.msra.mxu0 %v5227_v40  ;;  %3060 = vmatpush1.bf16.msra.mxu1 %v5230_v41  ;;  %v5280_v40 = vld [vmem:[%s7173_s7 + $0xcc] ss:$16 sps:$4 sm:$0xff]   ;;  %v5275_v41 = vld [vmem:[%s7173_s7 + $0xc0] ss:$16 sps:$4 sm:$0xff]   ;;  %v5289_v3 = vld [vmem:[%s7173_s7 + $0x104] ss:$16 sps:$4 sm:$0xff]  }
 0x1a3   :  { %2979 = vmatprep.subr.bf16.mxu0 %v5235_v45  ;;  %3061 = vmatprep.subr.bf16.mxu1 %v5238_v49  ;;  %v5281_v45 = vld [vmem:[%s7173_s7 + $0xe0] ss:$16 sps:$4 sm:$0xff]   ;;  %v5292_v47 = vld [vmem:[%s7173_s7 + $0x10c] ss:$16 sps:$4 sm:$0xff]   ;;  %v5290_v49 = vld [vmem:[%s7173_s7 + $0x108] ss:$16 sps:$4 sm:$0xff]  }
 0x1a6   :  { %2980 = vmatpush1.bf16.msra.mxu0 %v5233_v6  ;;  %3062 = vmatpush1.bf16.msra.mxu1 %v5236_v50  ;;  %v5295_v6 = vld [vmem:[%s7173_s7 + $0x124] ss:$16 sps:$4 sm:$0xff]   ;;  %v5298_v50 = vld [vmem:[%s7173_s7 + $0x12c] ss:$16 sps:$4 sm:$0xff]  }
 0x1a7   :  { %3878 = vmatprep.subr.bf16.mxu0 %v5241_v7  ;;  %3960 = vmatprep.subr.bf16.mxu1 %v5244_v10  ;;  %v5293_v7 = vld [vmem:[%s7173_s7 + $0x120] ss:$16 sps:$4 sm:$0xff]   ;;  %v5296_v10 = vld [vmem:[%s7173_s7 + $0x128] ss:$16 sps:$4 sm:$0xff]  }
 0x1db   :  { %v2028_v29 = vpop.f32.mrb[16].mxu0  ;;  %v2069_v53 = vpop.f32.mrb[16].mxu1 }
 0x1dc   :  { %v2029_v54 = vadd.f32 %v2028_v29, %v1988_v46  ;;  %v2030_v34 = vpop.f32.mrb[17].mxu0  ;;  %v2071_v55 = vpop.f32.mrb[17].mxu1  ;;  %v5284_v46 = vld [vmem:[%s7173_s7 + $0xe8] ss:$16 sps:$4 sm:$0xff]   ;;  %v5301_v29 = vld [vmem:[%s7173_s7 + $0x144] ss:$16 sps:$4 sm:$0xff]  }
 0x1dd   :  { %v2031_v56 = vadd.f32 %v2030_v34, %v1990_v48  ;;  %v2032_v58 = vpop.f32.mrb[18].mxu0  ;;  %v2073_v59 = vpop.f32.mrb[18].mxu1  ;;  %v5287_v48 = vld [vmem:[%s7173_s7 + $0x100] ss:$16 sps:$4 sm:$0xff]   ;;  %v5307_v34 = vld [vmem:[%s7173_s7 + $0x164] ss:$16 sps:$4 sm:$0xff]  }
 0x1de   :  { %v2070_v8 = vadd.f32 %v2069_v53, %v2029_v54  ;;  %v2033_v39 = vpop.f32.mrb[19].mxu0  ;;  %v2074_v60 = vpop.f32.mrb[19].mxu1  ;;  %v5304_v53 = vld [vmem:[%s7173_s7 + $0x14c] ss:$16 sps:$4 sm:$0xff]   ;;  %v5299_v54 = vld [vmem:[%s7173_s7 + $0x140] ss:$16 sps:$4 sm:$0xff]  }
 0x1df   :  { %v2072_v61 = vadd.f32 %v2071_v55, %v2031_v56  ;;  %v5310_v55 = vld [vmem:[%s7173_s7 + $0x16c] ss:$16 sps:$4 sm:$0xff]   ;;  %v5305_v56 = vld [vmem:[%s7173_s7 + $0x160] ss:$16 sps:$4 sm:$0xff]   ;;  %v5313_v58 = vld [vmem:[%s7173_s7 + $0x184] ss:$16 sps:$4 sm:$0xff]  }
 0x1e0   :  { %v2100_v52 = vadd.f32 %v2089_v28, %v2070_v8  ;;  %v5302_v28 = vld [vmem:[%s7173_s7 + $0x148] ss:$16 sps:$4 sm:$0xff]   ;;  %v5316_v59 = vld [vmem:[%s7173_s7 + $0x18c] ss:$16 sps:$4 sm:$0xff]   ;;  %v5311_v8 = vld [vmem:[%s7173_s7 + $0x180] ss:$16 sps:$4 sm:$0xff]  }
 0x1e1   :  { %v2101_v62 = vadd.f32 %v2093_v57, %v2072_v61  ;;  %v5308_v57 = vld [vmem:[%s7173_s7 + $0x168] ss:$16 sps:$4 sm:$0xff]   ;;  %v5319_v60 = vld [vmem:[%s7173_s7 + $0x1a4] ss:$16 sps:$4 sm:$0xff]   ;;  %v5322_v61 = vld [vmem:[%s7173_s7 + $0x1ac] ss:$16 sps:$4 sm:$0xff]  }
 0x1e2   :  { %vm2104_vm4 = vcmp.gt.f32.partialorder %v2100_v52, 0.0  ;;  %v2108_v63 = vmul.f32 0.2, %v2100_v52  ;;  %v5314_v39 = vld [vmem:[%s7173_s7 + $0x188] ss:$16 sps:$4 sm:$0xff]  }
 0x1e3   :  { %v2109_v0 = vmul.f32 0.2, %v2101_v62  ;;  %vm2105_vm5 = vcmp.gt.f32.partialorder %v2101_v62, 0.0 }
 0x1e4   :  { %v2112_v1 = vsel %vm2104_vm4, %v2100_v52, %v2108_v63  ;;  %v5317_v52 = vld [vmem:[%s7173_s7 + $0x1a0] ss:$16 sps:$4 sm:$0xff]   ;;  %v5325_v63 = vld [vmem:[%s7173_s7 + $0x1c4] ss:$16 sps:$4 sm:$0xff]  }
 0x1e5   :  { %v2113_v12 = vsel %vm2105_vm5, %v2101_v62, %v2109_v0  ;;  %v2116_v15 = vpack.c.bf16 %v2112_v1, %v2112_v1  ;;  %v5320_v62 = vld [vmem:[%s7173_s7 + $0x1a8] ss:$16 sps:$4 sm:$0xff]   ;;  %v5328_v0 = vld [vmem:[%s7173_s7 + $0x1cc] ss:$16 sps:$4 sm:$0xff]   ;;  %v5323_v1 = vld [vmem:[%s7173_s7 + $0x1c0] ss:$16 sps:$4 sm:$0xff]  }
 0x1e6   :  { %v2117_v13 = vpack.c.bf16 %v2113_v12, %v2113_v12  ;;  %v5326_v12 = vld [vmem:[%s7173_s7 + $0x1c8] ss:$16 sps:$4 sm:$0xff]  }
 0x1e8   :  { %2981 = vmatprep.mubr.bf16.mxu0 %v2117_v13  ;;  %3063 = vmatprep.mubr.bf16.mxu1 %v2117_v13  ;;  %v5331_v13 = vld [vmem:[%s7173_s7 + $0x1e4] ss:$16 sps:$4 sm:$0xff]  }
 0x1e9   :  { %2982 = vmatmul.mubr.bf16.vlgmr.msra.gmra.mrb[20].mxu0 %v2116_v15  ;;  %3064 = vmatmul.mubr.bf16.vlgmr.msra.gmra.mrb[20].mxu1 %v2116_v15  ;;  %v5332_v15 = vld [vmem:[%s7173_s7 + $0x1e8] ss:$16 sps:$4 sm:$0xff]  }
 0x1ea   :  { %3879 = vmatpush1.bf16.msra.mxu0 %v5239_v14  ;;  %3961 = vmatpush1.bf16.msra.mxu1 %v5242_v9  ;;  %v5334_v14 = vld [vmem:[%s7173_s7 + $0x1ec] ss:$16 sps:$4 sm:$0xff]   ;;  %v5329_v9 = vld [vmem:[%s7173_s7 + $0x1e0] ss:$16 sps:$4 sm:$0xff]  }
 0x1eb   :  { %3880 = vmatprep.subr.bf16.mxu0 %v5247_v16  ;;  %3962 = vmatprep.subr.bf16.mxu1 %v5250_v17  ;;  %v5337_v16 = vld [vmem:[%s7173_s7 + $0x204] ss:$16 sps:$4 sm:$0xff]   ;;  %v5340_v17 = vld [vmem:[%s7173_s7 + $0x20c] ss:$16 sps:$4 sm:$0xff]  }
 0x1ee   :  { %3881 = vmatpush1.bf16.msra.mxu0 %v5245_v18  ;;  %3963 = vmatpush1.bf16.msra.mxu1 %v5248_v19  ;;  %v6948_v18 = vld [vmem:[%s7174_s6] sm:$0xf] }
 0x1ef   :  { %3882 = vmatprep.subr.bf16.mxu0 %v5253_v20  ;;  %3964 = vmatprep.subr.bf16.mxu1 %v5256_v21  ;;  %v2251_v19 = vrot.slane %v6948_v18, %v6533_v4  ;;  %v2255_v20 = vrot.slane %v6948_v18, %v6541_v11  ;;  %v2263_v21 = vrot.slane %v6948_v18, %v6747_v24 }
 0x1f2   :  { %3883 = vmatpush1.bf16.msra.mxu0 %v5251_v22  ;;  %3965 = vmatpush1.bf16.msra.mxu1 %v5254_v23 }
 0x1f3   :  { %3884 = vmatprep.subr.bf16.mxu0 %v5259_v25  ;;  %3966 = vmatprep.subr.bf16.mxu1 %v5262_v26 }
 0x1f6   :  { %3885 = vmatpush1.bf16.msra.mxu0 %v5257_v27  ;;  %3967 = vmatpush1.bf16.msra.mxu1 %v5260_v30 }
 0x1f7   :  { %3886 = vmatprep.subr.bf16.mxu0 %v5265_v31  ;;  %3968 = vmatprep.subr.bf16.mxu1 %v5268_v32 }
 0x1fa   :  { %3887 = vmatpush1.bf16.msra.mxu0 %v5263_v2  ;;  %3969 = vmatpush1.bf16.msra.mxu1 %v5266_v5 }
 0x1fb   :  { %3888 = vmatprep.subr.bf16.mxu0 %v5271_v33  ;;  %3970 = vmatprep.subr.bf16.mxu1 %v5274_v35 }
 0x1fe   :  { %3889 = vmatpush1.bf16.msra.mxu0 %v5269_v36  ;;  %3971 = vmatpush1.bf16.msra.mxu1 %v5272_v37 }
 0x1ff   :  { %3890 = vmatprep.subr.bf16.mxu0 %v5277_v38  ;;  %3972 = vmatprep.subr.bf16.mxu1 %v5280_v40 }
 0x202   :  { %3891 = vmatpush1.bf16.msra.mxu0 %v5275_v41  ;;  %3973 = vmatpush1.bf16.msra.mxu1 %v5278_v42  ;;  %v5335_v42 = vld [vmem:[%s7173_s7 + $0x200] ss:$16 sps:$4 sm:$0xff]  }
 0x203   :  { %3892 = vmatprep.subr.bf16.mxu0 %v5283_v43  ;;  %3974 = vmatprep.subr.bf16.mxu1 %v5286_v44  ;;  %v5338_v43 = vld [vmem:[%s7173_s7 + $0x208] ss:$16 sps:$4 sm:$0xff]  }
 0x206   :  { %3893 = vmatpush1.bf16.msra.mxu0 %v5281_v45  ;;  %3975 = vmatpush1.bf16.msra.mxu1 %v5284_v46  ;;  %v5343_v46 = vld [vmem:[%s7173_s7 + $0x224] ss:$16 sps:$4 sm:$0xff]  }
 0x207   :  { %3894 = vmatprep.subr.bf16.mxu0 %v5289_v3  ;;  %3976 = vmatprep.subr.bf16.mxu1 %v5292_v47  ;;  %v5346_v3 = vld [vmem:[%s7173_s7 + $0x22c] ss:$16 sps:$4 sm:$0xff]  }
 0x20a   :  { %3895 = vmatpush1.bf16.msra.mxu0 %v5287_v48  ;;  %3977 = vmatpush1.bf16.msra.mxu1 %v5290_v49  ;;  %v5341_v48 = vld [vmem:[%s7173_s7 + $0x220] ss:$16 sps:$4 sm:$0xff]   ;;  %v5344_v49 = vld [vmem:[%s7173_s7 + $0x228] ss:$16 sps:$4 sm:$0xff]  }
 0x20b   :  { %3896 = vmatprep.subr.bf16.mxu0 %v5295_v6  ;;  %3978 = vmatprep.subr.bf16.mxu1 %v5298_v50  ;;  %v5349_v6 = vld [vmem:[%s7173_s7 + $0x244] ss:$16 sps:$4 sm:$0xff]   ;;  %v5352_v50 = vld [vmem:[%s7173_s7 + $0x24c] ss:$16 sps:$4 sm:$0xff]  }
 0x20e   :  { %3897 = vmatpush1.bf16.msra.mxu0 %v5293_v7  ;;  %3979 = vmatpush1.bf16.msra.mxu1 %v5296_v10  ;;  %v5347_v7 = vld [vmem:[%s7173_s7 + $0x240] ss:$16 sps:$4 sm:$0xff]   ;;  %v5350_v10 = vld [vmem:[%s7173_s7 + $0x248] ss:$16 sps:$4 sm:$0xff]  }
 0x20f   :  { %3898 = vmatprep.subr.bf16.mxu0 %v5301_v29  ;;  %3980 = vmatprep.subr.bf16.mxu1 %v5304_v53  ;;  %v5355_v29 = vld [vmem:[%s7173_s7 + $0x264] ss:$16 sps:$4 sm:$0xff]   ;;  %v5358_v53 = vld [vmem:[%s7173_s7 + $0x26c] ss:$16 sps:$4 sm:$0xff]  }
 0x212   :  { %3899 = vmatpush1.bf16.msra.mxu0 %v5299_v54  ;;  %3981 = vmatpush1.bf16.msra.mxu1 %v5302_v28  ;;  %v5353_v54 = vld [vmem:[%s7173_s7 + $0x260] ss:$16 sps:$4 sm:$0xff]   ;;  %v5356_v28 = vld [vmem:[%s7173_s7 + $0x268] ss:$16 sps:$4 sm:$0xff]  }
 0x213   :  { %3900 = vmatprep.subr.bf16.mxu0 %v5307_v34  ;;  %3982 = vmatprep.subr.bf16.mxu1 %v5310_v55  ;;  %v5361_v34 = vld [vmem:[%s7173_s7 + $0x284] ss:$16 sps:$4 sm:$0xff]   ;;  %v5364_v55 = vld [vmem:[%s7173_s7 + $0x28c] ss:$16 sps:$4 sm:$0xff]  }
 0x216   :  { %3901 = vmatpush1.bf16.msra.mxu0 %v5305_v56  ;;  %3983 = vmatpush1.bf16.msra.mxu1 %v5308_v57  ;;  %v5359_v56 = vld [vmem:[%s7173_s7 + $0x280] ss:$16 sps:$4 sm:$0xff]   ;;  %v5362_v57 = vld [vmem:[%s7173_s7 + $0x288] ss:$16 sps:$4 sm:$0xff]  }
 0x217   :  { %3902 = vmatprep.subr.bf16.mxu0 %v5313_v58  ;;  %3984 = vmatprep.subr.bf16.mxu1 %v5316_v59  ;;  %v5367_v58 = vld [vmem:[%s7173_s7 + $0x2a4] ss:$16 sps:$4 sm:$0xff]   ;;  %v5370_v59 = vld [vmem:[%s7173_s7 + $0x2ac] ss:$16 sps:$4 sm:$0xff]  }
 0x21a   :  { %3903 = vmatpush1.bf16.msra.mxu0 %v5311_v8  ;;  %3985 = vmatpush1.bf16.msra.mxu1 %v5314_v39  ;;  %v5365_v8 = vld [vmem:[%s7173_s7 + $0x2a0] ss:$16 sps:$4 sm:$0xff]   ;;  %v5368_v39 = vld [vmem:[%s7173_s7 + $0x2a8] ss:$16 sps:$4 sm:$0xff]  }
 0x21b   :  { %3904 = vmatprep.subr.bf16.mxu0 %v5319_v60  ;;  %3986 = vmatprep.subr.bf16.mxu1 %v5322_v61  ;;  %v5373_v60 = vld [vmem:[%s7173_s7 + $0x2c4] ss:$16 sps:$4 sm:$0xff]   ;;  %v5376_v61 = vld [vmem:[%s7173_s7 + $0x2cc] ss:$16 sps:$4 sm:$0xff]  }
 0x21e   :  { %3905 = vmatpush1.bf16.msra.mxu0 %v5317_v52  ;;  %3987 = vmatpush1.bf16.msra.mxu1 %v5320_v62  ;;  %v5371_v52 = vld [vmem:[%s7173_s7 + $0x2c0] ss:$16 sps:$4 sm:$0xff]   ;;  %v5374_v62 = vld [vmem:[%s7173_s7 + $0x2c8] ss:$16 sps:$4 sm:$0xff]  }
 0x21f   :  { %3906 = vmatprep.subr.bf16.mxu0 %v5325_v63  ;;  %3988 = vmatprep.subr.bf16.mxu1 %v5328_v0  ;;  %v5379_v63 = vld [vmem:[%s7173_s7 + $0x2e4] ss:$16 sps:$4 sm:$0xff]   ;;  %v5382_v0 = vld [vmem:[%s7173_s7 + $0x2ec] ss:$16 sps:$4 sm:$0xff]  }
 0x222   :  { %3907 = vmatpush1.bf16.msra.mxu0 %v5323_v1  ;;  %3989 = vmatpush1.bf16.msra.mxu1 %v5326_v12  ;;  %v5377_v1 = vld [vmem:[%s7173_s7 + $0x2e0] ss:$16 sps:$4 sm:$0xff]   ;;  %v5380_v12 = vld [vmem:[%s7173_s7 + $0x2e8] ss:$16 sps:$4 sm:$0xff]  }
 0x223   :  { %3908 = vmatprep.subr.bf16.mxu0 %v5331_v13  ;;  %3990 = vmatprep.subr.bf16.mxu1 %v5334_v14  ;;  %v5385_v13 = vld [vmem:[%s7173_s7 + $0x304] ss:$16 sps:$4 sm:$0xff]   ;;  %v5388_v14 = vld [vmem:[%s7173_s7 + $0x30c] ss:$16 sps:$4 sm:$0xff]  }
 0x226   :  { %3909 = vmatpush1.bf16.msra.mxu0 %v5329_v9  ;;  %3991 = vmatpush1.bf16.msra.mxu1 %v5332_v15  ;;  %v5383_v9 = vld [vmem:[%s7173_s7 + $0x300] ss:$16 sps:$4 sm:$0xff]   ;;  %v5386_v15 = vld [vmem:[%s7173_s7 + $0x308] ss:$16 sps:$4 sm:$0xff]  }
 0x227   :  { %3919 = vmatprep.subr.bf16.mxu0 %v5337_v16  ;;  %4001 = vmatprep.subr.bf16.mxu1 %v5340_v17  ;;  %v5391_v16 = vld [vmem:[%s7173_s7 + $0x324] ss:$16 sps:$4 sm:$0xff]   ;;  %v5394_v17 = vld [vmem:[%s7173_s7 + $0x32c] ss:$16 sps:$4 sm:$0xff]  }
 0x2bc   :  { %v2983_v22 = vpop.f32.mrb[20].mxu0  ;;  %v6956_v23 = vpop.f32.mrb[20].mxu1 }
 0x2bd   :  { %v4632_v25 = vadd.f32 %v2983_v22, %v2251_v19  ;;  %v2985_v26 = vpop.f32.mrb[21].mxu0  ;;  %v3067_v27 = vpop.f32.mrb[21].mxu1  ;;  %v5389_v19 = vld [vmem:[%s7173_s7 + $0x320] ss:$16 sps:$4 sm:$0xff]   ;;  %v5400_v22 = vld [vmem:[%s7173_s7 + $0x34c] ss:$16 sps:$4 sm:$0xff]  }
 0x2be   :  { %v4633_v30 = vadd.f32 %v2985_v26, %v2255_v20  ;;  %v4635_v31 = vadd.f32 %v3067_v27, %v2263_v21  ;;  %v2987_v32 = vpop.f32.mrb[22].mxu0  ;;  %v3069_v2 = vpop.f32.mrb[22].mxu1  ;;  %v5392_v20 = vld [vmem:[%s7173_s7 + $0x328] ss:$16 sps:$4 sm:$0xff]   ;;  %v5397_v21 = vld [vmem:[%s7173_s7 + $0x344] ss:$16 sps:$4 sm:$0xff]  }
 0x2bf   :  { %vm3072_vm6 = vcmp.gt.f32.partialorder %v4632_v25, 0.0  ;;  %v3076_v5 = vmul.f32 0.2, %v4632_v25  ;;  %v2988_v37 = vpop.f32.mrb[23].mxu0  ;;  %v3070_v38 = vpop.f32.mrb[23].mxu1 }
 0x2c0   :  { %vm3073_vm7 = vcmp.gt.f32.partialorder %v4633_v30, 0.0  ;;  %v3077_v33 = vmul.f32 0.2, %v4633_v30  ;;  %vm3075_vm8 = vcmp.gt.f32.partialorder %v4635_v31, 0.0  ;;  %v3079_v35 = vmul.f32 0.2, %v4635_v31 }
 0x2c1   :  { %v3080_v36 = vsel %vm3072_vm6, %v4632_v25, %v3076_v5  ;;  %v5395_v25 = vld [vmem:[%s7173_s7 + $0x340] ss:$16 sps:$4 sm:$0xff]   ;;  %v5398_v26 = vld [vmem:[%s7173_s7 + $0x348] ss:$16 sps:$4 sm:$0xff]   ;;  %v5403_v27 = vld [vmem:[%s7173_s7 + $0x364] ss:$16 sps:$4 sm:$0xff]   ;;  %v2259_v38 = vrot.slane %v6948_v18, %v6744_v51 }
 0x2c2   :  { %v3081_v40 = vsel %vm3073_vm7, %v4633_v30, %v3077_v33  ;;  %v3083_v44 = vsel %vm3075_vm8, %v4635_v31, %v3079_v35  ;;  %v3084_v45 = vpack.c.bf16 %v3080_v36, %v3080_v36  ;;  %v5406_v30 = vld [vmem:[%s7173_s7 + $0x36c] ss:$16 sps:$4 sm:$0xff]   ;;  %v5401_v31 = vld [vmem:[%s7173_s7 + $0x360] ss:$16 sps:$4 sm:$0xff]   ;;  %v5404_v32 = vld [vmem:[%s7173_s7 + $0x368] ss:$16 sps:$4 sm:$0xff]  }
 0x2c3   :  { %v3085_v41 = vpack.c.bf16 %v3081_v40, %v3081_v40  ;;  %v3087_v47 = vpack.c.bf16 %v3083_v44, %v3083_v44  ;;  %v5409_v2 = vld [vmem:[%s7173_s7 + $0x384] ss:$16 sps:$4 sm:$0xff]   ;;  %v5412_v5 = vld [vmem:[%s7173_s7 + $0x38c] ss:$16 sps:$4 sm:$0xff]   ;;  %v5407_v33 = vld [vmem:[%s7173_s7 + $0x380] ss:$16 sps:$4 sm:$0xff]  }
 0x2c4   :  { %v5410_v35 = vld [vmem:[%s7173_s7 + $0x388] ss:$16 sps:$4 sm:$0xff]   ;;  %v5415_v36 = vld [vmem:[%s7173_s7 + $0x3a4] ss:$16 sps:$4 sm:$0xff]   ;;  %v5418_v37 = vld [vmem:[%s7173_s7 + $0x3ac] ss:$16 sps:$4 sm:$0xff]  }
 0x2c5   :  { %3910 = vmatprep.mubr.bf16.mxu0 %v3085_v41  ;;  %3992 = vmatprep.mubr.bf16.mxu1 %v3085_v41  ;;  %v5413_v40 = vld [vmem:[%s7173_s7 + $0x3a0] ss:$16 sps:$4 sm:$0xff]   ;;  %v5416_v41 = vld [vmem:[%s7173_s7 + $0x3a8] ss:$16 sps:$4 sm:$0xff]   ;;  %v5424_v18 = vld [vmem:[%s7173_s7 + $0x3cc] ss:$16 sps:$4 sm:$0xff]  }
 0x2c6   :  { %3911 = vmatmul.mubr.bf16.vlgmr.msra.gmra.mrb[24].mxu0 %v3084_v45  ;;  %3993 = vmatmul.mubr.bf16.vlgmr.msra.gmra.mrb[24].mxu1 %v3084_v45  ;;  %v5419_v44 = vld [vmem:[%s7173_s7 + $0x3c0] ss:$16 sps:$4 sm:$0xff]   ;;  %v5422_v45 = vld [vmem:[%s7173_s7 + $0x3c8] ss:$16 sps:$4 sm:$0xff]  }
 0x2c7   :  { %3920 = vmatpush1.bf16.msra.mxu0 %v5335_v42  ;;  %4002 = vmatpush1.bf16.msra.mxu1 %v5338_v43  ;;  %v5421_v42 = vld [vmem:[%s7173_s7 + $0x3c4] ss:$16 sps:$4 sm:$0xff]   ;;  %v4634_v43 = vadd.f32 %v6956_v23, %v2259_v38  ;;  %v5430_v23 = vld [vmem:[%s7173_s7 + $0x3ec] ss:$16 sps:$4 sm:$0xff]  }
 0x2c8   :  { %3951 = vmatprep.mubr.bf16.mxu0 %v3087_v47  ;;  %4033 = vmatprep.mubr.bf16.mxu1 %v3087_v47  ;;  %v5425_v47 = vld [vmem:[%s7173_s7 + $0x3e0] ss:$16 sps:$4 sm:$0xff]  }
 0x2c9   :  { %3921 = vmatprep.subr.bf16.mxu0 %v5343_v46  ;;  %4003 = vmatprep.subr.bf16.mxu1 %v5346_v3  ;;  %v5427_v46 = vld [vmem:[%s7173_s7 + $0x3e4] ss:$16 sps:$4 sm:$0xff]   ;;  %v3078_v3 = vmul.f32 0.2, %v4634_v43  ;;  %vm3074_vm9 = vcmp.gt.f32.partialorder %v4634_v43, 0.0 }
 0x2cb   :  { %3922 = vmatpush1.bf16.msra.mxu0 %v5341_v48  ;;  %4004 = vmatpush1.bf16.msra.mxu1 %v5344_v49  ;;  %v5428_v48 = vld [vmem:[%s7173_s7 + $0x3e8] ss:$16 sps:$4 sm:$0xff]   ;;  %v3082_v49 = vsel %vm3074_vm9, %v4634_v43, %v3078_v3 }
 0x2cc   :  { %3923 = vmatprep.subr.bf16.mxu0 %v5349_v6  ;;  %4005 = vmatprep.subr.bf16.mxu1 %v5352_v50  ;;  %v3086_v6 = vpack.c.bf16 %v3082_v49, %v3082_v49  ;;  %v16_v50 = vstv %s7175_s10 }
 0x2cd   :  { %17 = vst [vmem:[#allocation2] sm:$0x1] %v16_v50 }
 0x2cf   :  { %3924 = vmatpush1.bf16.msra.mxu0 %v5347_v7  ;;  %4006 = vmatpush1.bf16.msra.mxu1 %v5350_v10  ;;  %v3216_v7 = vld [vmem:[%s7176_s8] sm:$0xf] }
 0x2d0   :  { %3925 = vmatprep.subr.bf16.mxu0 %v5355_v29  ;;  %4007 = vmatprep.subr.bf16.mxu1 %v5358_v53  ;;  %v3221_v10 = vrot.slane %v3216_v7, %v6533_v4  ;;  %v3229_v29 = vrot.slane %v3216_v7, %v6744_v51  ;;  %v4054_v53 = vld [vmem:[%s7177_s9] sm:$0xf] }
 0x2d3   :  { %3926 = vmatpush1.bf16.msra.mxu0 %v5353_v54  ;;  %4008 = vmatpush1.bf16.msra.mxu1 %v5356_v28  ;;  %v3225_v54 = vrot.slane %v3216_v7, %v6541_v11  ;;  %v3233_v28 = vrot.slane %v3216_v7, %v6747_v24 }
 0x2d4   :  { %3927 = vmatprep.subr.bf16.mxu0 %v5361_v34  ;;  %4009 = vmatprep.subr.bf16.mxu1 %v5364_v55 }
 0x2d7   :  { %3928 = vmatpush1.bf16.msra.mxu0 %v5359_v56  ;;  %4010 = vmatpush1.bf16.msra.mxu1 %v5362_v57  ;;  %v4059_v57 = vrot.slane %v4054_v53, %v6533_v4 }
 0x2d8   :  { %3929 = vmatprep.subr.bf16.mxu0 %v5367_v58  ;;  %4011 = vmatprep.subr.bf16.mxu1 %v5370_v59 }
 0x2db   :  { %3930 = vmatpush1.bf16.msra.mxu0 %v5365_v8  ;;  %4012 = vmatpush1.bf16.msra.mxu1 %v5368_v39 }
 0x2dc   :  { %3931 = vmatprep.subr.bf16.mxu0 %v5373_v60  ;;  %4013 = vmatprep.subr.bf16.mxu1 %v5376_v61  ;;  %v4063_v60 = vrot.slane %v4054_v53, %v6541_v11 }
 0x2df   :  { %3932 = vmatpush1.bf16.msra.mxu0 %v5371_v52  ;;  %4014 = vmatpush1.bf16.msra.mxu1 %v5374_v62 }
 0x2e0   :  { %3933 = vmatprep.subr.bf16.mxu0 %v5379_v63  ;;  %4015 = vmatprep.subr.bf16.mxu1 %v5382_v0  ;;  %v4067_v63 = vrot.slane %v4054_v53, %v6744_v51 }
 0x2e3   :  { %3934 = vmatpush1.bf16.msra.mxu0 %v5377_v1  ;;  %4016 = vmatpush1.bf16.msra.mxu1 %v5380_v12 }
 0x2e4   :  { %3935 = vmatprep.subr.bf16.mxu0 %v5385_v13  ;;  %4017 = vmatprep.subr.bf16.mxu1 %v5388_v14 }
 0x2e7   :  { %3936 = vmatpush1.bf16.msra.mxu0 %v5383_v9  ;;  %4018 = vmatpush1.bf16.msra.mxu1 %v5386_v15 }
 0x2e8   :  { %3937 = vmatprep.subr.bf16.mxu0 %v5391_v16  ;;  %4019 = vmatprep.subr.bf16.mxu1 %v5394_v17  ;;  %v4071_v16 = vrot.slane %v4054_v53, %v6747_v24 }
 0x2eb   :  { %3938 = vmatpush1.bf16.msra.mxu0 %v5389_v19  ;;  %4020 = vmatpush1.bf16.msra.mxu1 %v5392_v20 }
 0x2ec   :  { %3939 = vmatprep.subr.bf16.mxu0 %v5397_v21  ;;  %4021 = vmatprep.subr.bf16.mxu1 %v5400_v22 }
 0x2ef   :  { %3940 = vmatpush1.bf16.msra.mxu0 %v5395_v25  ;;  %4022 = vmatpush1.bf16.msra.mxu1 %v5398_v26 }
 0x2f0   :  { %3941 = vmatprep.subr.bf16.mxu0 %v5403_v27  ;;  %4023 = vmatprep.subr.bf16.mxu1 %v5406_v30 }
 0x2f3   :  { %3942 = vmatpush1.bf16.msra.mxu0 %v5401_v31  ;;  %4024 = vmatpush1.bf16.msra.mxu1 %v5404_v32 }
 0x2f4   :  { %3943 = vmatprep.subr.bf16.mxu0 %v5409_v2  ;;  %4025 = vmatprep.subr.bf16.mxu1 %v5412_v5  ;;  %v4630_v2 = vld [vmem:[#allocation2] ss:$0 sm:$0xff] }
 0x2f7   :  { %3944 = vmatpush1.bf16.msra.mxu0 %v5407_v33  ;;  %4026 = vmatpush1.bf16.msra.mxu1 %v5410_v35 }
 0x2f8   :  { %3945 = vmatprep.subr.bf16.mxu0 %v5415_v36  ;;  %4027 = vmatprep.subr.bf16.mxu1 %v5418_v37 }
 0x2fb   :  { %3946 = vmatpush1.bf16.msra.mxu0 %v5413_v40  ;;  %4028 = vmatpush1.bf16.msra.mxu1 %v5416_v41 }
 0x2fc   :  { %3947 = vmatprep.subr.bf16.mxu0 %v5421_v42  ;;  %4029 = vmatprep.subr.bf16.mxu1 %v5424_v18 }
 0x2ff   :  { %3948 = vmatpush1.bf16.msra.mxu0 %v5419_v44  ;;  %4030 = vmatpush1.bf16.msra.mxu1 %v5422_v45 }
 0x300   :  { %3949 = vmatprep.subr.bf16.mxu0 %v5427_v46  ;;  %4031 = vmatprep.subr.bf16.mxu1 %v5430_v23 }
 0x303   :  { %3950 = vmatpush1.bf16.msra.mxu0 %v5425_v47  ;;  %4032 = vmatpush1.bf16.msra.mxu1 %v5428_v48 }
 0x306   :  { %3952 = vmatmul.mubr.bf16.vlgmr.msra.gmra.mrb[24].mxu0 %v3086_v6  ;;  %4034 = vmatmul.mubr.bf16.vlgmr.msra.gmra.mrb[24].mxu1 %v3086_v6 }
 0x3d9   :  { %v3953_v34 = vpop.f32.mrb[24].mxu0  ;;  %v4035_v55 = vpop.f32.mrb[24].mxu1 }
 0x3da   :  { %v4636_v56 = vadd.f32 %v3953_v34, %v3221_v10  ;;  %v4638_v58 = vadd.f32 %v4035_v55, %v3229_v29  ;;  %v3955_v59 = vpop.f32.mrb[25].mxu0  ;;  %v4037_v8 = vpop.f32.mrb[25].mxu1 }
 0x3db   :  { %v4637_v39 = vadd.f32 %v3955_v59, %v3225_v54  ;;  %v4639_v61 = vadd.f32 %v4037_v8, %v3233_v28  ;;  %v3957_v52 = vpop.f32.mrb[26].mxu0  ;;  %v4039_v62 = vpop.f32.mrb[26].mxu1 }
 0x3dc   :  { %vm4042_vm10 = vcmp.gt.f32.partialorder %v4636_v56, 0.0  ;;  %v4046_v0 = vmul.f32 0.2, %v4636_v56  ;;  %vm4044_vm11 = vcmp.gt.f32.partialorder %v4638_v58, 0.0  ;;  %v4048_v1 = vmul.f32 0.2, %v4638_v58 }
 0x3dd   :  { %vm4043_vm12 = vcmp.gt.f32.partialorder %v4637_v39, 0.0  ;;  %v4047_v12 = vmul.f32 0.2, %v4637_v39  ;;  %vm4045_vm13 = vcmp.gt.f32.partialorder %v4639_v61, 0.0  ;;  %v4049_v13 = vmul.f32 0.2, %v4639_v61 }
 0x3de   :  { %v4050_v4 = vsel %vm4042_vm10, %v4636_v56, %v4046_v0  ;;  %v4052_v14 = vsel %vm4044_vm11, %v4638_v58, %v4048_v1  ;;  %v3958_v9 = vpop.f32.mrb[27].mxu0  ;;  %v4040_v15 = vpop.f32.mrb[27].mxu1 }
 0x3df   :  { %v4076_v11 = vmul.f32 %v4059_v57, %v4050_v4  ;;  %v4051_v17 = vsel %vm4043_vm12, %v4637_v39, %v4047_v12  ;;  %v4053_v19 = vsel %vm4045_vm13, %v4639_v61, %v4049_v13  ;;  %v4078_v51 = vmul.f32 %v4067_v63, %v4052_v14 }
 0x3e0   :  { %v4077_v20 = vmul.f32 %v4063_v60, %v4051_v17  ;;  %v4079_v22 = vmul.f32 %v4071_v16, %v4053_v19 }
 0x3e1   :  { %v4081_v21 = vsel %vm4080_vm14, %v4076_v11, 0.0  ;;  %v4084_v27 = vsel %vm4080_vm14, %v4078_v51, 0.0 }
 0x3e2   :  { %v4082_v25 = vsel %vm4080_vm14, %v4077_v20, 0.0  ;;  %v4086_v31 = vsel %vm4080_vm14, %v4079_v22, 0.0 }
 0x3e3   :  { %v4083_v26 = vadd.f32 %v4082_v25, %v4081_v21 }
 0x3e5   :  { %v4085_v30 = vadd.f32 %v4084_v27, %v4083_v26 }
 0x3e7   :  { %v4087_v32 = vadd.f32 %v4086_v31, %v4085_v30 }
 0x3e9   :  { %4088 = vadd.xlane.f32.xlu0 %v4087_v32 }
 0x476   :  { %v4089_v5 = vpop.xlane.xlu0 %4088 }
 0x477   :  { %v4097_v33 = vadd.f32 %v4630_v2, %v4089_v5 }
 0x479   :  { %v4631_v35 = vmul.f32 -1.442695, %v4097_v33 }
 0x47b   :  { %5431 = vpow2.f32 %v4631_v35 }
 0x485   :  { %v5432_v24 = vpop.eup %5431 }
 0x486   :  { %v4101_v36 = vadd.f32 1.0, %v5432_v24 }
 0x488   :  { %5433 = vrcp.f32 %v4101_v36 }
 0x492   :  { %v5434_v37 = vpop.eup %5433 }
 0x493   :  { %4105 = vst.msk [vmem:[%s7178_s11] sm:$0x3] %vm4104_vm15, %v5434_v37 }

</bundles_post_ra>
